<compile_context>
chip_gen: v5e
topology: v5e:2x2
jax: 0.10.0
libtpu: 0.0.40
codegen_flags: <defaults>
</compile_context>

<pallas_src>
import math

import jax
import jax.numpy as jnp
from jax.experimental import pallas as pl
from jax.experimental.pallas import tpu as pltpu


# ----------------------------------------------------------------------------
# In-kernel math helpers (f32)
# ----------------------------------------------------------------------------

def _gelu(x):
    # TODO(synk): tanh-approx GELU; HF RoBERTa uses the erf variant (~1e-3 deltas).
    c = math.sqrt(2.0 / math.pi)
    return 0.5 * x * (1.0 + jnp.tanh(c * (x + 0.044715 * x * x * x)))


def _layernorm(x, g, b, eps=1e-5):
    mu = jnp.mean(x, axis=-1, keepdims=True)
    var = jnp.mean(jnp.square(x - mu), axis=-1, keepdims=True)
    return (x - mu) * jax.lax.rsqrt(var + eps) * g + b


# ----------------------------------------------------------------------------
# Fused encoder kernel: embedding LayerNorm (step 0) + all transformer layers.
# grid = (num_layers,); activations carried in a VMEM scratch across the grid.
# ----------------------------------------------------------------------------

def _make_encoder_kernel(B, nh):
    def kernel(emb_ref, mask_ref, emb_g_ref, emb_b_ref,
               wqkv_ref, bqkv_ref, wo_ref, bo_ref, g1_ref, be1_ref,
               w1_ref, b1_ref, w2_ref, b2_ref, g2_ref, be2_ref,
               o_ref, x_scr):
        BS, H = x_scr.shape
        S = BS // B
        dh = H // nh
        scale = 1.0 / math.sqrt(dh)

        # Step 0: embedding LayerNorm (emb was summed in f32 outside the kernel).
        @pl.when(pl.program_id(0) == 0)
        def _():
            x_scr[...] = _layernorm(emb_ref[...], emb_g_ref[...], emb_b_ref[...])

        x = x_scr[...]                                   # (BS, H) f32
        x_bf = x.astype(jnp.bfloat16)

        # Fused QKV projection: one wide MXU pass, (BS,H) @ (H,3H).
        qkv = jnp.dot(x_bf, wqkv_ref[0],
                      preferred_element_type=jnp.float32) + bqkv_ref[0]   # (BS, 3H)

        mask = mask_ref[...]                             # (B, S) additive f32

        # Per-(batch, head) attention on static slices of the fused QKV result.
        # TODO(synk): at real RoBERTa scale this becomes a flash-style loop with
        # 128-multiple key tiles; at (S=8, dh=32) unrolled static slices lower best.
        batch_ctx = []
        for b in range(B):
            rows = qkv[b * S:(b + 1) * S, :]             # (S, 3H)
            neg = mask[b:b + 1, :]                       # (1, S) additive key mask
            head_ctx = []
            for h in range(nh):
                qh = rows[:, h * dh:(h + 1) * dh].astype(jnp.bfloat16)
                kh = rows[:, H + h * dh:H + (h + 1) * dh].astype(jnp.bfloat16)
                vh = rows[:, 2 * H + h * dh:2 * H + (h + 1) * dh].astype(jnp.bfloat16)
                s = jnp.einsum("qd,kd->qk", qh, kh,
                               preferred_element_type=jnp.float32) * scale
                s = s + neg
                s = s - jnp.max(s, axis=-1, keepdims=True)
                p = jnp.exp(s)
                p = p / jnp.sum(p, axis=-1, keepdims=True)      # exact softmax
                head_ctx.append(
                    jnp.dot(p.astype(jnp.bfloat16), vh,
                            preferred_element_type=jnp.float32))  # (S, dh)
            batch_ctx.append(jnp.concatenate(head_ctx, axis=-1))  # (S, H)
        ctx = jnp.concatenate(batch_ctx, axis=0)                  # (BS, H) f32

        # Single output projection: concat-of-heads @ Wo (original layout).
        attn = jnp.dot(ctx.astype(jnp.bfloat16), wo_ref[0],
                       preferred_element_type=jnp.float32) + bo_ref[0]

        # residual + LayerNorm 1 (f32)
        y = _layernorm(x + attn, g1_ref[0], be1_ref[0])

        # FFN: (BS,H)@(H,I) GELU (BS,I)@(I,H), bf16 MXU inputs, f32 accumulate.
        h1 = jnp.dot(y.astype(jnp.bfloat16), w1_ref[0],
                     preferred_element_type=jnp.float32) + b1_ref[0]
        h1 = _gelu(h1)
        h2 = jnp.dot(h1.astype(jnp.bfloat16), w2_ref[0],
                     preferred_element_type=jnp.float32) + b2_ref[0]

        # residual + LayerNorm 2 (f32)
        z = _layernorm(y + h2, g2_ref[0], be2_ref[0])
        x_scr[...] = z
        o_ref[...] = z

    return kernel


def pallas_roberta_encoder(emb, mask_add, emb_ln_g, emb_ln_b, enc, *, B, nh):
    """emb: (B*S, H) f32; mask_add: (B, S) f32 additive mask; enc: stacked layer params."""
    BS, H = emb.shape
    Lnum = enc["wqkv"].shape[0]

    def shared(shape):
        nd = len(shape)
        return pl.BlockSpec(shape, lambda l, _n=nd: (0,) * _n)

    def per_layer(arr):
        shape = arr.shape
        nd = len(shape)
        return pl.BlockSpec((1,) + shape[1:], lambda l, _n=nd: (l,) + (0,) * (_n - 1))

    in_specs = [
        shared((BS, H)),                         # emb (f32)
        shared(mask_add.shape),                  # additive mask
        shared(emb_ln_g.shape),                  # emb LN gamma
        shared(emb_ln_b.shape),                  # emb LN beta
        per_layer(enc["wqkv"]), per_layer(enc["bqkv"]),
        per_layer(enc["wo"]), per_layer(enc["bo"]),
        per_layer(enc["ln1_g"]), per_layer(enc["ln1_b"]),
        per_layer(enc["w1"]), per_layer(enc["b1"]),
        per_layer(enc["w2"]), per_layer(enc["b2"]),
        per_layer(enc["ln2_g"]), per_layer(enc["ln2_b"]),
    ]

    return pl.pallas_call(
        _make_encoder_kernel(B, nh),
        out_shape=jax.ShapeDtypeStruct((BS, H), jnp.float32),
        grid=(Lnum,),
        in_specs=in_specs,
        out_specs=pl.BlockSpec((BS, H), lambda l: (0, 0)),
        scratch_shapes=[pltpu.VMEM((BS, H), jnp.float32)],
        compiler_params=pltpu.CompilerParams(
            dimension_semantics=("arbitrary",)),
    )(
        emb, mask_add, emb_ln_g, emb_ln_b,
        enc["wqkv"], enc["bqkv"], enc["wo"], enc["bo"],
        enc["ln1_g"], enc["ln1_b"],
        enc["w1"], enc["b1"], enc["w2"], enc["b2"],
        enc["ln2_g"], enc["ln2_b"],
    )


# ----------------------------------------------------------------------------
# Parameters (deterministic synthetic init; weights stored in kernel layout)
# ----------------------------------------------------------------------------

def init_params(key, cfg):
    H, I = cfg["hidden_size"], cfg["intermediate_size"]
    Lnum = cfg["num_layers"]
    NL = cfg["num_labels"]
    keys = iter(jax.random.split(key, 16 + 8 * Lnum))

    def w(shape, dtype=jnp.bfloat16):
        return (jax.random.normal(next(keys), shape, jnp.float32) * 0.02).astype(dtype)

    def stack(fn):
        return jnp.stack([fn() for _ in range(Lnum)], axis=0)

    return {
        "word_emb": w((cfg["vocab_size"], H), jnp.float32),
        "pos_emb": w((cfg["max_position_embeddings"], H), jnp.float32),
        "type_emb": w((1, H), jnp.float32),
        "emb_ln_g": jnp.ones((1, H), jnp.float32),
        "emb_ln_b": jnp.zeros((1, H), jnp.float32),
        "enc": {
            # wq | wk | wv concatenated along the output dim -> single fused QKV matmul.
            # (column h*dh + d of each block belongs to head h, matching the concat@Wo layout)
            "wqkv": stack(lambda: w((H, 3 * H))),
            "bqkv": jnp.zeros((Lnum, 1, 3 * H), jnp.float32),
            "wo": stack(lambda: w((H, H))),
            "bo": jnp.zeros((Lnum, 1, H), jnp.float32),
            "ln1_g": jnp.ones((Lnum, 1, H), jnp.float32),
            "ln1_b": jnp.zeros((Lnum, 1, H), jnp.float32),
            "w1": stack(lambda: w((H, I))),
            "b1": jnp.zeros((Lnum, 1, I), jnp.float32),
            "w2": stack(lambda: w((I, H))),
            "b2": jnp.zeros((Lnum, 1, H), jnp.float32),
            "ln2_g": jnp.ones((Lnum, 1, H), jnp.float32),
            "ln2_b": jnp.zeros((Lnum, 1, H), jnp.float32),
        },
        # num_labels independent Linear(H, 2) heads stacked into one (H, 2*NL)
        "cls_w": w((H, NL * 2), jnp.float32),
        "cls_b": jnp.zeros((NL * 2,), jnp.float32),
    }


# ----------------------------------------------------------------------------
# Forward pass (mirrors MultiClassifierRobertaModel.forward)
# ----------------------------------------------------------------------------

def multi_classifier_roberta_forward(params, cfg, input_ids, attention_mask, labels=None):
    B, S = input_ids.shape
    H = cfg["hidden_size"]
    NL = cfg["num_labels"]
    nh = cfg["num_heads"]

    # --- RoBERTa embeddings: gather is glue; the LayerNorm runs inside the fused kernel ---
    pad_idx = 1
    assert S + pad_idx < cfg["max_position_embeddings"], "sequence too long for position table"
    am_i = attention_mask.astype(jnp.int32)
    positions = jnp.cumsum(am_i, axis=1) * am_i + pad_idx       # RoBERTa position ids

    word = jnp.take(params["word_emb"], input_ids, axis=0)      # (B, S, H) f32
    pos = jnp.take(params["pos_emb"], positions, axis=0)        # (B, S, H) f32
    emb = (word + pos + params["type_emb"][0][None, None, :]).reshape(B * S, H)  # f32 add

    # additive key mask: 0 keep / -1e9 masked, shape (B, S) f32
    mask_add = (1.0 - attention_mask.astype(jnp.float32)) * -1e9

    # --- whole encoder (embedding LN + all layers) in one fused pallas_call ---
    hidden = pallas_roberta_encoder(
        emb, mask_add, params["emb_ln_g"], params["emb_ln_b"], params["enc"],
        B=B, nh=nh).reshape(B, S, H)

    # --- CLS token + stacked classifier heads (tiny (B,H)@(H,2*NL): plain JAX) ---
    cls_hidden = hidden[:, 0, :]                                  # (B, H) f32
    logits = (cls_hidden @ params["cls_w"] + params["cls_b"]).reshape(B, NL, 2)

    if labels is not None:
        # per-task cross entropy averaged over tasks == mean over all (B, NL) cells
        logp = jax.nn.log_softmax(logits, axis=-1)
        nll = -jnp.take_along_axis(logp, labels[..., None].astype(jnp.int32),
                                   axis=-1)[..., 0]
        return {"loss": jnp.mean(nll), "logits": logits}
    return {"logits": logits}


# ----------------------------------------------------------------------------
# Main
# ----------------------------------------------------------------------------

if __name__ == "__main__":
    cfg = dict(
        vocab_size=100,
        hidden_size=64,
        num_heads=2,
        num_layers=2,
        intermediate_size=128,
        max_position_embeddings=40,
        num_labels=3,
    )
    B, S = 2, 8

    root = jax.random.PRNGKey(0)
    k_params, k_ids = jax.random.split(root)
    params = init_params(k_params, cfg)

    input_ids = jax.random.randint(k_ids, (B, S), 2, cfg["vocab_size"], dtype=jnp.int32)
    attention_mask = jnp.concatenate(
        [jnp.ones((B, 6), jnp.int32), jnp.zeros((B, 2), jnp.int32)], axis=1)
    labels = jnp.array([[0, 1, 0], [1, 0, 1]], dtype=jnp.int32)

    out = multi_classifier_roberta_forward(params, cfg, input_ids, attention_mask)
    jax.block_until_ready(out["logits"])
    assert out["logits"].shape == (B, cfg["num_labels"], 2)

    out_l = multi_classifier_roberta_forward(params, cfg, input_ids, attention_mask, labels)
    jax.block_until_ready(out_l["loss"])

    print("KERNEL_OK")
</pallas_src>

<mosaic_0001>
module attributes {stable_mosaic.version = 11 : i64} {
  func.func @kernel(%arg0: i32, %arg1: memref<16x64xf32, #tpu.memory_space<vmem>>, %arg2: memref<2x8xf32, #tpu.memory_space<vmem>>, %arg3: memref<1x64xf32, #tpu.memory_space<vmem>>, %arg4: memref<1x64xf32, #tpu.memory_space<vmem>>, %arg5: memref<1x64x192xbf16, #tpu.memory_space<vmem>>, %arg6: memref<1x1x192xf32, #tpu.memory_space<vmem>>, %arg7: memref<1x64x64xbf16, #tpu.memory_space<vmem>>, %arg8: memref<1x1x64xf32, #tpu.memory_space<vmem>>, %arg9: memref<1x1x64xf32, #tpu.memory_space<vmem>>, %arg10: memref<1x1x64xf32, #tpu.memory_space<vmem>>, %arg11: memref<1x64x128xbf16, #tpu.memory_space<vmem>>, %arg12: memref<1x1x128xf32, #tpu.memory_space<vmem>>, %arg13: memref<1x128x64xbf16, #tpu.memory_space<vmem>>, %arg14: memref<1x1x64xf32, #tpu.memory_space<vmem>>, %arg15: memref<1x1x64xf32, #tpu.memory_space<vmem>>, %arg16: memref<1x1x64xf32, #tpu.memory_space<vmem>>, %arg17: memref<16x64xf32, #tpu.memory_space<vmem>>, %arg18: memref<16x64xf32, #tpu.memory_space<vmem>>) attributes {dimension_semantics = [#tpu.dimension_semantics<arbitrary>], iteration_bounds = array<i64: 2>, scalar_prefetch = 0 : i64, scratch_operands = 1 : i64, tpu.core_type = #tpu.core_type<tc>, window_params = [{pipeline_mode = #tpu.pipeline_mode<synchronous>, transform_indices = @transform_0, window_bounds = array<i64: 16, 64>}, {pipeline_mode = #tpu.pipeline_mode<synchronous>, transform_indices = @transform_1, window_bounds = array<i64: 2, 8>}, {pipeline_mode = #tpu.pipeline_mode<synchronous>, transform_indices = @transform_2, window_bounds = array<i64: 1, 64>}, {pipeline_mode = #tpu.pipeline_mode<synchronous>, transform_indices = @transform_3, window_bounds = array<i64: 1, 64>}, {transform_indices = @transform_4, window_bounds = array<i64: 1, 64, 192>}, {transform_indices = @transform_5, window_bounds = array<i64: 1, 1, 192>}, {transform_indices = @transform_6, window_bounds = array<i64: 1, 64, 64>}, {transform_indices = @transform_7, window_bounds = array<i64: 1, 1, 64>}, {transform_indices = @transform_8, window_bounds = array<i64: 1, 1, 64>}, {transform_indices = @transform_9, window_bounds = array<i64: 1, 1, 64>}, {transform_indices = @transform_10, window_bounds = array<i64: 1, 64, 128>}, {transform_indices = @transform_11, window_bounds = array<i64: 1, 1, 128>}, {transform_indices = @transform_12, window_bounds = array<i64: 1, 128, 64>}, {transform_indices = @transform_13, window_bounds = array<i64: 1, 1, 64>}, {transform_indices = @transform_14, window_bounds = array<i64: 1, 1, 64>}, {transform_indices = @transform_15, window_bounds = array<i64: 1, 1, 64>}, {pipeline_mode = #tpu.pipeline_mode<synchronous>, transform_indices = @transform_16, window_bounds = array<i64: 16, 64>}]} {
    %c0_i32 = arith.constant 0 : i32
    %0 = arith.cmpi eq, %arg0, %c0_i32 : i32
    %1 = arith.extui %0 : i1 to i32
    %c0_i32_0 = arith.constant 0 : i32
    %2 = arith.cmpi ne, %1, %c0_i32_0 : i32
    scf.if %2 {
      %c0_81 = arith.constant 0 : index
      %c0_82 = arith.constant 0 : index
      %201 = vector.load %arg1[%c0_81, %c0_82] : memref<16x64xf32, #tpu.memory_space<vmem>>, vector<16x64xf32>
      %c0_83 = arith.constant 0 : index
      %c0_84 = arith.constant 0 : index
      %202 = vector.load %arg3[%c0_83, %c0_84] : memref<1x64xf32, #tpu.memory_space<vmem>>, vector<1x64xf32>
      %c0_85 = arith.constant 0 : index
      %c0_86 = arith.constant 0 : index
      %203 = vector.load %arg4[%c0_85, %c0_86] : memref<1x64xf32, #tpu.memory_space<vmem>>, vector<1x64xf32>
      %cst_87 = arith.constant dense<0.000000e+00> : vector<16xf32>
      %204 = vector.multi_reduction <add>, %201, %cst_87 [1] : vector<16x64xf32> to vector<16xf32>
      %205 = vector.shape_cast %204 : vector<16xf32> to vector<16x1xf32>
      %cst_88 = arith.constant 6.400000e+01 : f32
      %206 = vector.broadcast %cst_88 : f32 to vector<16x1xf32>
      %207 = arith.divf %205, %206 : vector<16x1xf32>
      %208 = vector.broadcast %207 : vector<16x1xf32> to vector<16x64xf32>
      %209 = arith.subf %201, %208 : vector<16x64xf32>
      %210 = arith.mulf %209, %209 : vector<16x64xf32>
      %cst_89 = arith.constant dense<0.000000e+00> : vector<16xf32>
      %211 = vector.multi_reduction <add>, %210, %cst_89 [1] : vector<16x64xf32> to vector<16xf32>
      %212 = vector.shape_cast %211 : vector<16xf32> to vector<16x1xf32>
      %cst_90 = arith.constant 6.400000e+01 : f32
      %213 = vector.broadcast %cst_90 : f32 to vector<16x1xf32>
      %214 = arith.divf %212, %213 : vector<16x1xf32>
      %215 = vector.broadcast %207 : vector<16x1xf32> to vector<16x64xf32>
      %216 = arith.subf %201, %215 : vector<16x64xf32>
      %cst_91 = arith.constant 9.99999974E-6 : f32
      %217 = vector.broadcast %cst_91 : f32 to vector<16x1xf32>
      %218 = arith.addf %214, %217 : vector<16x1xf32>
      %219 = math.rsqrt %218 : vector<16x1xf32>
      %220 = vector.broadcast %219 : vector<16x1xf32> to vector<16x64xf32>
      %221 = arith.mulf %216, %220 : vector<16x64xf32>
      %222 = vector.broadcast %202 : vector<1x64xf32> to vector<16x64xf32>
      %223 = arith.mulf %221, %222 : vector<16x64xf32>
      %224 = vector.broadcast %203 : vector<1x64xf32> to vector<16x64xf32>
      %225 = arith.addf %223, %224 : vector<16x64xf32>
      %c0_92 = arith.constant 0 : index
      %c0_93 = arith.constant 0 : index
      %226 = vector.load %arg18[%c0_92, %c0_93] : memref<16x64xf32, #tpu.memory_space<vmem>>, vector<16x64xf32>
      tpu.vector_store %arg18[%c0_92, %c0_93], %225 {strides = array<i32>} : memref<16x64xf32, #tpu.memory_space<vmem>>, vector<16x64xf32>,
    } else {
    }
    %c0 = arith.constant 0 : index
    %c0_1 = arith.constant 0 : index
    %3 = vector.load %arg18[%c0, %c0_1] : memref<16x64xf32, #tpu.memory_space<vmem>>, vector<16x64xf32>
    %4 = arith.truncf %3 : vector<16x64xf32> to vector<16x64xbf16>
    %c0_2 = arith.constant 0 : index
    %c0_3 = arith.constant 0 : index
    %c0_4 = arith.constant 0 : index
    %5 = vector.load %arg5[%c0_2, %c0_3, %c0_4] : memref<1x64x192xbf16, #tpu.memory_space<vmem>>, vector<1x64x192xbf16>
    %6 = vector.shape_cast %5 : vector<1x64x192xbf16> to vector<64x192xbf16>
    %cst = arith.constant dense<0.000000e+00> : vector<16x192xf32>
    %7 = tpu.matmul %4, %6, %cst {dimension_numbers = #tpu.dot_dimension_numbers<[1], [0], [0], [1], [0, 0, 1, 1], [], []>} : vector<16x64xbf16>, vector<64x192xbf16>, vector<16x192xf32> -> vector<16x192xf32>
    %c0_5 = arith.constant 0 : index
    %c0_6 = arith.constant 0 : index
    %c0_7 = arith.constant 0 : index
    %8 = vector.load %arg6[%c0_5, %c0_6, %c0_7] : memref<1x1x192xf32, #tpu.memory_space<vmem>>, vector<1x1x192xf32>
    %9 = vector.shape_cast %8 : vector<1x1x192xf32> to vector<1x192xf32>
    %10 = vector.broadcast %9 : vector<1x192xf32> to vector<16x192xf32>
    %11 = arith.addf %7, %10 : vector<16x192xf32>
    %c0_8 = arith.constant 0 : index
    %c0_9 = arith.constant 0 : index
    %12 = vector.load %arg2[%c0_8, %c0_9] : memref<2x8xf32, #tpu.memory_space<vmem>>, vector<2x8xf32>
    %13 = vector.extract_strided_slice %11 {offsets = [0, 0], sizes = [8, 192], strides = [1, 1]} : vector<16x192xf32> to vector<8x192xf32>
    %14 = vector.extract_strided_slice %12 {offsets = [0, 0], sizes = [1, 8], strides = [1, 1]} : vector<2x8xf32> to vector<1x8xf32>
    %15 = vector.extract_strided_slice %13 {offsets = [0, 0], sizes = [8, 32], strides = [1, 1]} : vector<8x192xf32> to vector<8x32xf32>
    %16 = arith.truncf %15 : vector<8x32xf32> to vector<8x32xbf16>
    %17 = vector.extract_strided_slice %13 {offsets = [0, 64], sizes = [8, 32], strides = [1, 1]} : vector<8x192xf32> to vector<8x32xf32>
    %18 = arith.truncf %17 : vector<8x32xf32> to vector<8x32xbf16>
    %19 = vector.extract_strided_slice %13 {offsets = [0, 128], sizes = [8, 32], strides = [1, 1]} : vector<8x192xf32> to vector<8x32xf32>
    %20 = arith.truncf %19 : vector<8x32xf32> to vector<8x32xbf16>
    "tpu.trace_start"() <{level = 10 : i32, message = "qd,kd->qk"}> : () -> ()
    %cst_10 = arith.constant dense<0.000000e+00> : vector<8x8xf32>
    %21 = tpu.matmul %16, %18, %cst_10 {dimension_numbers = #tpu.dot_dimension_numbers<[1], [1], [0], [0], [0, 0, 1, 0], [], []>} : vector<8x32xbf16>, vector<8x32xbf16>, vector<8x8xf32> -> vector<8x8xf32>
    "tpu.trace_stop"() : () -> ()
    %cst_11 = arith.constant 0.176776692 : f32
    %22 = vector.broadcast %cst_11 : f32 to vector<8x8xf32>
    %23 = arith.mulf %21, %22 : vector<8x8xf32>
    %24 = vector.broadcast %14 : vector<1x8xf32> to vector<8x8xf32>
    %25 = arith.addf %23, %24 : vector<8x8xf32>
    %cst_12 = arith.constant dense<0xFF800000> : vector<8xf32>
    %26 = vector.multi_reduction <maximumf>, %25, %cst_12 [1] : vector<8x8xf32> to vector<8xf32>
    %27 = vector.shape_cast %26 : vector<8xf32> to vector<8x1xf32>
    %28 = vector.broadcast %27 : vector<8x1xf32> to vector<8x8xf32>
    %29 = arith.subf %25, %28 : vector<8x8xf32>
    %30 = math.exp %29 : vector<8x8xf32>
    %cst_13 = arith.constant dense<0.000000e+00> : vector<8xf32>
    %31 = vector.multi_reduction <add>, %30, %cst_13 [1] : vector<8x8xf32> to vector<8xf32>
    %32 = vector.shape_cast %31 : vector<8xf32> to vector<8x1xf32>
    %33 = vector.broadcast %32 : vector<8x1xf32> to vector<8x8xf32>
    %34 = arith.divf %30, %33 : vector<8x8xf32>
    %35 = arith.truncf %34 : vector<8x8xf32> to vector<8x8xbf16>
    %cst_14 = arith.constant dense<0.000000e+00> : vector<8x32xf32>
    %36 = tpu.matmul %35, %20, %cst_14 {dimension_numbers = #tpu.dot_dimension_numbers<[1], [0], [0], [1], [0, 0, 1, 1], [], []>} : vector<8x8xbf16>, vector<8x32xbf16>, vector<8x32xf32> -> vector<8x32xf32>
    %37 = vector.extract_strided_slice %13 {offsets = [0, 32], sizes = [8, 32], strides = [1, 1]} : vector<8x192xf32> to vector<8x32xf32>
    %38 = arith.truncf %37 : vector<8x32xf32> to vector<8x32xbf16>
    %39 = vector.extract_strided_slice %13 {offsets = [0, 96], sizes = [8, 32], strides = [1, 1]} : vector<8x192xf32> to vector<8x32xf32>
    %40 = arith.truncf %39 : vector<8x32xf32> to vector<8x32xbf16>
    %41 = vector.extract_strided_slice %13 {offsets = [0, 160], sizes = [8, 32], strides = [1, 1]} : vector<8x192xf32> to vector<8x32xf32>
    %42 = arith.truncf %41 : vector<8x32xf32> to vector<8x32xbf16>
    "tpu.trace_start"() <{level = 10 : i32, message = "qd,kd->qk"}> : () -> ()
    %cst_15 = arith.constant dense<0.000000e+00> : vector<8x8xf32>
    %43 = tpu.matmul %38, %40, %cst_15 {dimension_numbers = #tpu.dot_dimension_numbers<[1], [1], [0], [0], [0, 0, 1, 0], [], []>} : vector<8x32xbf16>, vector<8x32xbf16>, vector<8x8xf32> -> vector<8x8xf32>
    "tpu.trace_stop"() : () -> ()
    %cst_16 = arith.constant 0.176776692 : f32
    %44 = vector.broadcast %cst_16 : f32 to vector<8x8xf32>
    %45 = arith.mulf %43, %44 : vector<8x8xf32>
    %46 = vector.broadcast %14 : vector<1x8xf32> to vector<8x8xf32>
    %47 = arith.addf %45, %46 : vector<8x8xf32>
    %cst_17 = arith.constant dense<0xFF800000> : vector<8xf32>
    %48 = vector.multi_reduction <maximumf>, %47, %cst_17 [1] : vector<8x8xf32> to vector<8xf32>
    %49 = vector.shape_cast %48 : vector<8xf32> to vector<8x1xf32>
    %50 = vector.broadcast %49 : vector<8x1xf32> to vector<8x8xf32>
    %51 = arith.subf %47, %50 : vector<8x8xf32>
    %52 = math.exp %51 : vector<8x8xf32>
    %cst_18 = arith.constant dense<0.000000e+00> : vector<8xf32>
    %53 = vector.multi_reduction <add>, %52, %cst_18 [1] : vector<8x8xf32> to vector<8xf32>
    %54 = vector.shape_cast %53 : vector<8xf32> to vector<8x1xf32>
    %55 = vector.broadcast %54 : vector<8x1xf32> to vector<8x8xf32>
    %56 = arith.divf %52, %55 : vector<8x8xf32>
    %57 = arith.truncf %56 : vector<8x8xf32> to vector<8x8xbf16>
    %cst_19 = arith.constant dense<0.000000e+00> : vector<8x32xf32>
    %58 = tpu.matmul %57, %42, %cst_19 {dimension_numbers = #tpu.dot_dimension_numbers<[1], [0], [0], [1], [0, 0, 1, 1], [], []>} : vector<8x8xbf16>, vector<8x32xbf16>, vector<8x32xf32> -> vector<8x32xf32>
    %59 = tpu.concatenate %36, %58 in 1 : vector<8x32xf32>, vector<8x32xf32> -> vector<8x64xf32>
    %60 = vector.extract_strided_slice %11 {offsets = [8, 0], sizes = [8, 192], strides = [1, 1]} : vector<16x192xf32> to vector<8x192xf32>
    %61 = vector.extract_strided_slice %12 {offsets = [1, 0], sizes = [1, 8], strides = [1, 1]} : vector<2x8xf32> to vector<1x8xf32>
    %62 = vector.extract_strided_slice %60 {offsets = [0, 0], sizes = [8, 32], strides = [1, 1]} : vector<8x192xf32> to vector<8x32xf32>
    %63 = arith.truncf %62 : vector<8x32xf32> to vector<8x32xbf16>
    %64 = vector.extract_strided_slice %60 {offsets = [0, 64], sizes = [8, 32], strides = [1, 1]} : vector<8x192xf32> to vector<8x32xf32>
    %65 = arith.truncf %64 : vector<8x32xf32> to vector<8x32xbf16>
    %66 = vector.extract_strided_slice %60 {offsets = [0, 128], sizes = [8, 32], strides = [1, 1]} : vector<8x192xf32> to vector<8x32xf32>
    %67 = arith.truncf %66 : vector<8x32xf32> to vector<8x32xbf16>
    "tpu.trace_start"() <{level = 10 : i32, message = "qd,kd->qk"}> : () -> ()
    %cst_20 = arith.constant dense<0.000000e+00> : vector<8x8xf32>
    %68 = tpu.matmul %63, %65, %cst_20 {dimension_numbers = #tpu.dot_dimension_numbers<[1], [1], [0], [0], [0, 0, 1, 0], [], []>} : vector<8x32xbf16>, vector<8x32xbf16>, vector<8x8xf32> -> vector<8x8xf32>
    "tpu.trace_stop"() : () -> ()
    %cst_21 = arith.constant 0.176776692 : f32
    %69 = vector.broadcast %cst_21 : f32 to vector<8x8xf32>
    %70 = arith.mulf %68, %69 : vector<8x8xf32>
    %71 = vector.broadcast %61 : vector<1x8xf32> to vector<8x8xf32>
    %72 = arith.addf %70, %71 : vector<8x8xf32>
    %cst_22 = arith.constant dense<0xFF800000> : vector<8xf32>
    %73 = vector.multi_reduction <maximumf>, %72, %cst_22 [1] : vector<8x8xf32> to vector<8xf32>
    %74 = vector.shape_cast %73 : vector<8xf32> to vector<8x1xf32>
    %75 = vector.broadcast %74 : vector<8x1xf32> to vector<8x8xf32>
    %76 = arith.subf %72, %75 : vector<8x8xf32>
    %77 = math.exp %76 : vector<8x8xf32>
    %cst_23 = arith.constant dense<0.000000e+00> : vector<8xf32>
    %78 = vector.multi_reduction <add>, %77, %cst_23 [1] : vector<8x8xf32> to vector<8xf32>
    %79 = vector.shape_cast %78 : vector<8xf32> to vector<8x1xf32>
    %80 = vector.broadcast %79 : vector<8x1xf32> to vector<8x8xf32>
    %81 = arith.divf %77, %80 : vector<8x8xf32>
    %82 = arith.truncf %81 : vector<8x8xf32> to vector<8x8xbf16>
    %cst_24 = arith.constant dense<0.000000e+00> : vector<8x32xf32>
    %83 = tpu.matmul %82, %67, %cst_24 {dimension_numbers = #tpu.dot_dimension_numbers<[1], [0], [0], [1], [0, 0, 1, 1], [], []>} : vector<8x8xbf16>, vector<8x32xbf16>, vector<8x32xf32> -> vector<8x32xf32>
    %84 = vector.extract_strided_slice %60 {offsets = [0, 32], sizes = [8, 32], strides = [1, 1]} : vector<8x192xf32> to vector<8x32xf32>
    %85 = arith.truncf %84 : vector<8x32xf32> to vector<8x32xbf16>
    %86 = vector.extract_strided_slice %60 {offsets = [0, 96], sizes = [8, 32], strides = [1, 1]} : vector<8x192xf32> to vector<8x32xf32>
    %87 = arith.truncf %86 : vector<8x32xf32> to vector<8x32xbf16>
    %88 = vector.extract_strided_slice %60 {offsets = [0, 160], sizes = [8, 32], strides = [1, 1]} : vector<8x192xf32> to vector<8x32xf32>
    %89 = arith.truncf %88 : vector<8x32xf32> to vector<8x32xbf16>
    "tpu.trace_start"() <{level = 10 : i32, message = "qd,kd->qk"}> : () -> ()
    %cst_25 = arith.constant dense<0.000000e+00> : vector<8x8xf32>
    %90 = tpu.matmul %85, %87, %cst_25 {dimension_numbers = #tpu.dot_dimension_numbers<[1], [1], [0], [0], [0, 0, 1, 0], [], []>} : vector<8x32xbf16>, vector<8x32xbf16>, vector<8x8xf32> -> vector<8x8xf32>
    "tpu.trace_stop"() : () -> ()
    %cst_26 = arith.constant 0.176776692 : f32
    %91 = vector.broadcast %cst_26 : f32 to vector<8x8xf32>
    %92 = arith.mulf %90, %91 : vector<8x8xf32>
    %93 = vector.broadcast %61 : vector<1x8xf32> to vector<8x8xf32>
    %94 = arith.addf %92, %93 : vector<8x8xf32>
    %cst_27 = arith.constant dense<0xFF800000> : vector<8xf32>
    %95 = vector.multi_reduction <maximumf>, %94, %cst_27 [1] : vector<8x8xf32> to vector<8xf32>
    %96 = vector.shape_cast %95 : vector<8xf32> to vector<8x1xf32>
    %97 = vector.broadcast %96 : vector<8x1xf32> to vector<8x8xf32>
    %98 = arith.subf %94, %97 : vector<8x8xf32>
    %99 = math.exp %98 : vector<8x8xf32>
    %cst_28 = arith.constant dense<0.000000e+00> : vector<8xf32>
    %100 = vector.multi_reduction <add>, %99, %cst_28 [1] : vector<8x8xf32> to vector<8xf32>
    %101 = vector.shape_cast %100 : vector<8xf32> to vector<8x1xf32>
    %102 = vector.broadcast %101 : vector<8x1xf32> to vector<8x8xf32>
    %103 = arith.divf %99, %102 : vector<8x8xf32>
    %104 = arith.truncf %103 : vector<8x8xf32> to vector<8x8xbf16>
    %cst_29 = arith.constant dense<0.000000e+00> : vector<8x32xf32>
    %105 = tpu.matmul %104, %89, %cst_29 {dimension_numbers = #tpu.dot_dimension_numbers<[1], [0], [0], [1], [0, 0, 1, 1], [], []>} : vector<8x8xbf16>, vector<8x32xbf16>, vector<8x32xf32> -> vector<8x32xf32>
    %106 = tpu.concatenate %83, %105 in 1 : vector<8x32xf32>, vector<8x32xf32> -> vector<8x64xf32>
    %107 = tpu.concatenate %59, %106 in 0 : vector<8x64xf32>, vector<8x64xf32> -> vector<16x64xf32>
    %108 = arith.truncf %107 : vector<16x64xf32> to vector<16x64xbf16>
    %c0_30 = arith.constant 0 : index
    %c0_31 = arith.constant 0 : index
    %c0_32 = arith.constant 0 : index
    %109 = vector.load %arg7[%c0_30, %c0_31, %c0_32] : memref<1x64x64xbf16, #tpu.memory_space<vmem>>, vector<1x64x64xbf16>
    %110 = vector.shape_cast %109 : vector<1x64x64xbf16> to vector<64x64xbf16>
    %cst_33 = arith.constant dense<0.000000e+00> : vector<16x64xf32>
    %111 = tpu.matmul %108, %110, %cst_33 {dimension_numbers = #tpu.dot_dimension_numbers<[1], [0], [0], [1], [0, 0, 1, 1], [], []>} : vector<16x64xbf16>, vector<64x64xbf16>, vector<16x64xf32> -> vector<16x64xf32>
    %c0_34 = arith.constant 0 : index
    %c0_35 = arith.constant 0 : index
    %c0_36 = arith.constant 0 : index
    %112 = vector.load %arg8[%c0_34, %c0_35, %c0_36] : memref<1x1x64xf32, #tpu.memory_space<vmem>>, vector<1x1x64xf32>
    %113 = vector.shape_cast %112 : vector<1x1x64xf32> to vector<1x64xf32>
    %114 = vector.broadcast %113 : vector<1x64xf32> to vector<16x64xf32>
    %115 = arith.addf %111, %114 : vector<16x64xf32>
    %116 = arith.addf %3, %115 : vector<16x64xf32>
    %c0_37 = arith.constant 0 : index
    %c0_38 = arith.constant 0 : index
    %c0_39 = arith.constant 0 : index
    %117 = vector.load %arg9[%c0_37, %c0_38, %c0_39] : memref<1x1x64xf32, #tpu.memory_space<vmem>>, vector<1x1x64xf32>
    %118 = vector.shape_cast %117 : vector<1x1x64xf32> to vector<1x64xf32>
    %c0_40 = arith.constant 0 : index
    %c0_41 = arith.constant 0 : index
    %c0_42 = arith.constant 0 : index
    %119 = vector.load %arg10[%c0_40, %c0_41, %c0_42] : memref<1x1x64xf32, #tpu.memory_space<vmem>>, vector<1x1x64xf32>
    %120 = vector.shape_cast %119 : vector<1x1x64xf32> to vector<1x64xf32>
    %cst_43 = arith.constant dense<0.000000e+00> : vector<16xf32>
    %121 = vector.multi_reduction <add>, %116, %cst_43 [1] : vector<16x64xf32> to vector<16xf32>
    %122 = vector.shape_cast %121 : vector<16xf32> to vector<16x1xf32>
    %cst_44 = arith.constant 6.400000e+01 : f32
    %123 = vector.broadcast %cst_44 : f32 to vector<16x1xf32>
    %124 = arith.divf %122, %123 : vector<16x1xf32>
    %125 = vector.broadcast %124 : vector<16x1xf32> to vector<16x64xf32>
    %126 = arith.subf %116, %125 : vector<16x64xf32>
    %127 = arith.mulf %126, %126 : vector<16x64xf32>
    %cst_45 = arith.constant dense<0.000000e+00> : vector<16xf32>
    %128 = vector.multi_reduction <add>, %127, %cst_45 [1] : vector<16x64xf32> to vector<16xf32>
    %129 = vector.shape_cast %128 : vector<16xf32> to vector<16x1xf32>
    %cst_46 = arith.constant 6.400000e+01 : f32
    %130 = vector.broadcast %cst_46 : f32 to vector<16x1xf32>
    %131 = arith.divf %129, %130 : vector<16x1xf32>
    %132 = vector.broadcast %124 : vector<16x1xf32> to vector<16x64xf32>
    %133 = arith.subf %116, %132 : vector<16x64xf32>
    %cst_47 = arith.constant 9.99999974E-6 : f32
    %134 = vector.broadcast %cst_47 : f32 to vector<16x1xf32>
    %135 = arith.addf %131, %134 : vector<16x1xf32>
    %136 = math.rsqrt %135 : vector<16x1xf32>
    %137 = vector.broadcast %136 : vector<16x1xf32> to vector<16x64xf32>
    %138 = arith.mulf %133, %137 : vector<16x64xf32>
    %139 = vector.broadcast %118 : vector<1x64xf32> to vector<16x64xf32>
    %140 = arith.mulf %138, %139 : vector<16x64xf32>
    %141 = vector.broadcast %120 : vector<1x64xf32> to vector<16x64xf32>
    %142 = arith.addf %140, %141 : vector<16x64xf32>
    %143 = arith.truncf %142 : vector<16x64xf32> to vector<16x64xbf16>
    %c0_48 = arith.constant 0 : index
    %c0_49 = arith.constant 0 : index
    %c0_50 = arith.constant 0 : index
    %144 = vector.load %arg11[%c0_48, %c0_49, %c0_50] : memref<1x64x128xbf16, #tpu.memory_space<vmem>>, vector<1x64x128xbf16>
    %145 = vector.shape_cast %144 : vector<1x64x128xbf16> to vector<64x128xbf16>
    %cst_51 = arith.constant dense<0.000000e+00> : vector<16x128xf32>
    %146 = tpu.matmul %143, %145, %cst_51 {dimension_numbers = #tpu.dot_dimension_numbers<[1], [0], [0], [1], [0, 0, 1, 1], [], []>} : vector<16x64xbf16>, vector<64x128xbf16>, vector<16x128xf32> -> vector<16x128xf32>
    %c0_52 = arith.constant 0 : index
    %c0_53 = arith.constant 0 : index
    %c0_54 = arith.constant 0 : index
    %147 = vector.load %arg12[%c0_52, %c0_53, %c0_54] : memref<1x1x128xf32, #tpu.memory_space<vmem>>, vector<1x1x128xf32>
    %148 = vector.shape_cast %147 : vector<1x1x128xf32> to vector<1x128xf32>
    %149 = vector.broadcast %148 : vector<1x128xf32> to vector<16x128xf32>
    %150 = arith.addf %146, %149 : vector<16x128xf32>
    %cst_55 = arith.constant 5.000000e-01 : f32
    %151 = vector.broadcast %cst_55 : f32 to vector<16x128xf32>
    %152 = arith.mulf %151, %150 : vector<16x128xf32>
    %cst_56 = arith.constant 4.471500e-02 : f32
    %153 = vector.broadcast %cst_56 : f32 to vector<16x128xf32>
    %154 = arith.mulf %153, %150 : vector<16x128xf32>
    %155 = arith.mulf %154, %150 : vector<16x128xf32>
    %156 = arith.mulf %155, %150 : vector<16x128xf32>
    %157 = arith.addf %150, %156 : vector<16x128xf32>
    %cst_57 = arith.constant 0.797884583 : f32
    %158 = vector.broadcast %cst_57 : f32 to vector<16x128xf32>
    %159 = arith.mulf %158, %157 : vector<16x128xf32>
    %160 = math.tanh %159 : vector<16x128xf32>
    %cst_58 = arith.constant 1.000000e+00 : f32
    %161 = vector.broadcast %cst_58 : f32 to vector<16x128xf32>
    %162 = arith.addf %161, %160 : vector<16x128xf32>
    %163 = arith.mulf %152, %162 : vector<16x128xf32>
    %164 = arith.truncf %163 : vector<16x128xf32> to vector<16x128xbf16>
    %c0_59 = arith.constant 0 : index
    %c0_60 = arith.constant 0 : index
    %c0_61 = arith.constant 0 : index
    %165 = vector.load %arg13[%c0_59, %c0_60, %c0_61] : memref<1x128x64xbf16, #tpu.memory_space<vmem>>, vector<1x128x64xbf16>
    %166 = vector.shape_cast %165 : vector<1x128x64xbf16> to vector<128x64xbf16>
    %cst_62 = arith.constant dense<0.000000e+00> : vector<16x64xf32>
    %167 = tpu.matmul %164, %166, %cst_62 {dimension_numbers = #tpu.dot_dimension_numbers<[1], [0], [0], [1], [0, 0, 1, 1], [], []>} : vector<16x128xbf16>, vector<128x64xbf16>, vector<16x64xf32> -> vector<16x64xf32>
    %c0_63 = arith.constant 0 : index
    %c0_64 = arith.constant 0 : index
    %c0_65 = arith.constant 0 : index
    %168 = vector.load %arg14[%c0_63, %c0_64, %c0_65] : memref<1x1x64xf32, #tpu.memory_space<vmem>>, vector<1x1x64xf32>
    %169 = vector.shape_cast %168 : vector<1x1x64xf32> to vector<1x64xf32>
    %170 = vector.broadcast %169 : vector<1x64xf32> to vector<16x64xf32>
    %171 = arith.addf %167, %170 : vector<16x64xf32>
    %172 = arith.addf %142, %171 : vector<16x64xf32>
    %c0_66 = arith.constant 0 : index
    %c0_67 = arith.constant 0 : index
    %c0_68 = arith.constant 0 : index
    %173 = vector.load %arg15[%c0_66, %c0_67, %c0_68] : memref<1x1x64xf32, #tpu.memory_space<vmem>>, vector<1x1x64xf32>
    %174 = vector.shape_cast %173 : vector<1x1x64xf32> to vector<1x64xf32>
    %c0_69 = arith.constant 0 : index
    %c0_70 = arith.constant 0 : index
    %c0_71 = arith.constant 0 : index
    %175 = vector.load %arg16[%c0_69, %c0_70, %c0_71] : memref<1x1x64xf32, #tpu.memory_space<vmem>>, vector<1x1x64xf32>
    %176 = vector.shape_cast %175 : vector<1x1x64xf32> to vector<1x64xf32>
    %cst_72 = arith.constant dense<0.000000e+00> : vector<16xf32>
    %177 = vector.multi_reduction <add>, %172, %cst_72 [1] : vector<16x64xf32> to vector<16xf32>
    %178 = vector.shape_cast %177 : vector<16xf32> to vector<16x1xf32>
    %cst_73 = arith.constant 6.400000e+01 : f32
    %179 = vector.broadcast %cst_73 : f32 to vector<16x1xf32>
    %180 = arith.divf %178, %179 : vector<16x1xf32>
    %181 = vector.broadcast %180 : vector<16x1xf32> to vector<16x64xf32>
    %182 = arith.subf %172, %181 : vector<16x64xf32>
    %183 = arith.mulf %182, %182 : vector<16x64xf32>
    %cst_74 = arith.constant dense<0.000000e+00> : vector<16xf32>
    %184 = vector.multi_reduction <add>, %183, %cst_74 [1] : vector<16x64xf32> to vector<16xf32>
    %185 = vector.shape_cast %184 : vector<16xf32> to vector<16x1xf32>
    %cst_75 = arith.constant 6.400000e+01 : f32
    %186 = vector.broadcast %cst_75 : f32 to vector<16x1xf32>
    %187 = arith.divf %185, %186 : vector<16x1xf32>
    %188 = vector.broadcast %180 : vector<16x1xf32> to vector<16x64xf32>
    %189 = arith.subf %172, %188 : vector<16x64xf32>
    %cst_76 = arith.constant 9.99999974E-6 : f32
    %190 = vector.broadcast %cst_76 : f32 to vector<16x1xf32>
    %191 = arith.addf %187, %190 : vector<16x1xf32>
    %192 = math.rsqrt %191 : vector<16x1xf32>
    %193 = vector.broadcast %192 : vector<16x1xf32> to vector<16x64xf32>
    %194 = arith.mulf %189, %193 : vector<16x64xf32>
    %195 = vector.broadcast %174 : vector<1x64xf32> to vector<16x64xf32>
    %196 = arith.mulf %194, %195 : vector<16x64xf32>
    %197 = vector.broadcast %176 : vector<1x64xf32> to vector<16x64xf32>
    %198 = arith.addf %196, %197 : vector<16x64xf32>
    %c0_77 = arith.constant 0 : index
    %c0_78 = arith.constant 0 : index
    %199 = vector.load %arg18[%c0_77, %c0_78] : memref<16x64xf32, #tpu.memory_space<vmem>>, vector<16x64xf32>
    tpu.vector_store %arg18[%c0_77, %c0_78], %198 {strides = array<i32>} : memref<16x64xf32, #tpu.memory_space<vmem>>, vector<16x64xf32>,
    %c0_79 = arith.constant 0 : index
    %c0_80 = arith.constant 0 : index
    %200 = vector.load %arg17[%c0_79, %c0_80] : memref<16x64xf32, #tpu.memory_space<vmem>>, vector<16x64xf32>
    tpu.vector_store %arg17[%c0_79, %c0_80], %198 {strides = array<i32>} : memref<16x64xf32, #tpu.memory_space<vmem>>, vector<16x64xf32>,
    return
  }
  func.func @transform_0(%arg0: i32) -> (i32, i32) {
    %c0_i32 = arith.constant 0 : i32
    %c0_i32_0 = arith.constant 0 : i32
    %c0_i32_1 = arith.constant 0 : i32
    return %c0_i32, %c0_i32_0 : i32, i32
  }
  func.func @transform_1(%arg0: i32) -> (i32, i32) {
    %c0_i32 = arith.constant 0 : i32
    %c0_i32_0 = arith.constant 0 : i32
    %c0_i32_1 = arith.constant 0 : i32
    return %c0_i32, %c0_i32_0 : i32, i32
  }
  func.func @transform_2(%arg0: i32) -> (i32, i32) {
    %c0_i32 = arith.constant 0 : i32
    %c0_i32_0 = arith.constant 0 : i32
    %c0_i32_1 = arith.constant 0 : i32
    return %c0_i32, %c0_i32_0 : i32, i32
  }
  func.func @transform_3(%arg0: i32) -> (i32, i32) {
    %c0_i32 = arith.constant 0 : i32
    %c0_i32_0 = arith.constant 0 : i32
    %c0_i32_1 = arith.constant 0 : i32
    return %c0_i32, %c0_i32_0 : i32, i32
  }
  func.func @transform_4(%arg0: i32) -> (i32, i32, i32) {
    %c0_i32 = arith.constant 0 : i32
    %c0_i32_0 = arith.constant 0 : i32
    %c0_i32_1 = arith.constant 0 : i32
    return %arg0, %c0_i32, %c0_i32_0 : i32, i32, i32
  }
  func.func @transform_5(%arg0: i32) -> (i32, i32, i32) {
    %c0_i32 = arith.constant 0 : i32
    %c0_i32_0 = arith.constant 0 : i32
    %c0_i32_1 = arith.constant 0 : i32
    return %arg0, %c0_i32, %c0_i32_0 : i32, i32, i32
  }
  func.func @transform_6(%arg0: i32) -> (i32, i32, i32) {
    %c0_i32 = arith.constant 0 : i32
    %c0_i32_0 = arith.constant 0 : i32
    %c0_i32_1 = arith.constant 0 : i32
    return %arg0, %c0_i32, %c0_i32_0 : i32, i32, i32
  }
  func.func @transform_7(%arg0: i32) -> (i32, i32, i32) {
    %c0_i32 = arith.constant 0 : i32
    %c0_i32_0 = arith.constant 0 : i32
    %c0_i32_1 = arith.constant 0 : i32
    return %arg0, %c0_i32, %c0_i32_0 : i32, i32, i32
  }
  func.func @transform_8(%arg0: i32) -> (i32, i32, i32) {
    %c0_i32 = arith.constant 0 : i32
    %c0_i32_0 = arith.constant 0 : i32
    %c0_i32_1 = arith.constant 0 : i32
    return %arg0, %c0_i32, %c0_i32_0 : i32, i32, i32
  }
  func.func @transform_9(%arg0: i32) -> (i32, i32, i32) {
    %c0_i32 = arith.constant 0 : i32
    %c0_i32_0 = arith.constant 0 : i32
    %c0_i32_1 = arith.constant 0 : i32
    return %arg0, %c0_i32, %c0_i32_0 : i32, i32, i32
  }
  func.func @transform_10(%arg0: i32) -> (i32, i32, i32) {
    %c0_i32 = arith.constant 0 : i32
    %c0_i32_0 = arith.constant 0 : i32
    %c0_i32_1 = arith.constant 0 : i32
    return %arg0, %c0_i32, %c0_i32_0 : i32, i32, i32
  }
  func.func @transform_11(%arg0: i32) -> (i32, i32, i32) {
    %c0_i32 = arith.constant 0 : i32
    %c0_i32_0 = arith.constant 0 : i32
    %c0_i32_1 = arith.constant 0 : i32
    return %arg0, %c0_i32, %c0_i32_0 : i32, i32, i32
  }
  func.func @transform_12(%arg0: i32) -> (i32, i32, i32) {
    %c0_i32 = arith.constant 0 : i32
    %c0_i32_0 = arith.constant 0 : i32
    %c0_i32_1 = arith.constant 0 : i32
    return %arg0, %c0_i32, %c0_i32_0 : i32, i32, i32
  }
  func.func @transform_13(%arg0: i32) -> (i32, i32, i32) {
    %c0_i32 = arith.constant 0 : i32
    %c0_i32_0 = arith.constant 0 : i32
    %c0_i32_1 = arith.constant 0 : i32
    return %arg0, %c0_i32, %c0_i32_0 : i32, i32, i32
  }
  func.func @transform_14(%arg0: i32) -> (i32, i32, i32) {
    %c0_i32 = arith.constant 0 : i32
    %c0_i32_0 = arith.constant 0 : i32
    %c0_i32_1 = arith.constant 0 : i32
    return %arg0, %c0_i32, %c0_i32_0 : i32, i32, i32
  }
  func.func @transform_15(%arg0: i32) -> (i32, i32, i32) {
    %c0_i32 = arith.constant 0 : i32
    %c0_i32_0 = arith.constant 0 : i32
    %c0_i32_1 = arith.constant 0 : i32
    return %arg0, %c0_i32, %c0_i32_0 : i32, i32, i32
  }
  func.func @transform_16(%arg0: i32) -> (i32, i32) {
    %c0_i32 = arith.constant 0 : i32
    %c0_i32_0 = arith.constant 0 : i32
    %c0_i32_1 = arith.constant 0 : i32
    return %c0_i32, %c0_i32_0 : i32, i32
  }
}

</mosaic_0001>

<bundles_post_ra>
// kernel: tpu_custom_call.1
= control target key start
LH: loop header
LB: loop body
LE: loop exit
PB: predicated region body
PF: predicated region fallthrough
CT: control target
= control target key end

     0   :  { %s2942_s0 = inlined_call_operand.hbm [shape: f32[16,64], index: 0, kind: input, shape index: {}]   ;;  %s2943_s1 = inlined_call_operand.vmem [shape: f32[2,8], index: 1, kind: input, shape index: {}]   ;;  %s2944_s2 = inlined_call_operand.hbm [shape: f32[1,64], index: 2, kind: input, shape index: {}]   ;;  %s2945_s3 = inlined_call_operand.hbm [shape: f32[1,64], index: 3, kind: input, shape index: {}]   ;;  %s2946_s4 = inlined_call_operand.vmem [shape: bf16[2,64,192], index: 4, kind: input, shape index: {}]   ;;  %s2947_s5 = inlined_call_operand.hbm [shape: f32[2,1,192], index: 5, kind: input, shape index: {}]   ;;  %s2948_s6 = inlined_call_operand.vmem [shape: bf16[2,64,64], index: 6, kind: input, shape index: {}]   ;;  %s2949_s7 = inlined_call_operand.vmem [shape: f32[2,1,64], index: 7, kind: input, shape index: {}]   ;;  %s2950_s8 = inlined_call_operand.hbm [shape: f32[2,1,64], index: 8, kind: input, shape index: {}]   ;;  %s2951_s9 = inlined_call_operand.vmem [shape: f32[2,1,64], index: 9, kind: input, shape index: {}]   ;;  %s2952_s10 = inlined_call_operand.hbm [shape: bf16[2,64,128], index: 10, kind: input, shape index: {}]   ;;  %s2953_s11 = inlined_call_operand.vmem [shape: f32[2,1,128], index: 11, kind: input, shape index: {}]   ;;  %s2954_s12 = inlined_call_operand.vmem [shape: bf16[2,128,64], index: 12, kind: input, shape index: {}]   ;;  %s2955_s13 = inlined_call_operand.vmem [shape: f32[2,1,64], index: 13, kind: input, shape index: {}]   ;;  %s2956_s14 = inlined_call_operand.hbm [shape: f32[2,1,64], index: 14, kind: input, shape index: {}]   ;;  %s2957_s15 = inlined_call_operand.vmem [shape: f32[2,1,64], index: 15, kind: input, shape index: {}]   ;;  %s2958_s16 = inlined_call_operand.hbm [shape: f32[16,64], index: 16, kind: output, shape index: {}]  }
   0x1   :  { %2962 = sst [smem:[#allocation24_spill]] %s2942_s0 }
   0x2   :  { %2963 = sst [smem:[#allocation25_spill]] %s2943_s1 }
   0x3   :  { %2964 = sst [smem:[#allocation26_spill]] %s2944_s2 }
   0x4   :  { %2965 = sst [smem:[#allocation27_spill]] %s2945_s3 }
   0x5   :  { %2966 = sst [smem:[#allocation28_spill]] %s2946_s4 }
   0x6   :  { %2967 = sst [smem:[#allocation29_spill]] %s2947_s5 }
   0x7   :  { %2968 = sst [smem:[#allocation30_spill]] %s2948_s6 }
   0x8   :  { %2969 = sst [smem:[#allocation31_spill]] %s2949_s7 }
   0x9   :  { %2970 = sst [smem:[#allocation32_spill]] %s2950_s8 }
   0xa   :  { %2971 = sst [smem:[#allocation33_spill]] %s2951_s9 }
   0xb   :  { %2972 = sst [smem:[#allocation34_spill]] %s2952_s10 }
   0xc   :  { %2973 = sst [smem:[#allocation35_spill]] %s2953_s11 }
   0xd   :  { %2974 = sst [smem:[#allocation36_spill]] %s2954_s12 }
   0xe   :  { %2975 = sst [smem:[#allocation37_spill]] %s2955_s13 }
   0xf   :  { %2976 = sst [smem:[#allocation38_spill]] %s2957_s15 }
  0x10   :  { %2977 = sst [smem:[#allocation39_spill]] %s2958_s16 }
  0x11   :  { %21 = vsyncpa [#allocation4], 0 }
  0x12   :  { %22 = vsyncpa [#allocation7], 0 }
  0x13   :  { %23 = vsyncpa [#allocation10], 0 }
  0x14   :  { %25 = vsyncpa [#allocation10 + $0x1], 0 }
  0x15   :  { %26 = vsyncpa [#allocation13], 0 }
  0x16   :  { %28 = vsyncpa [#allocation13 + $0x1], 0 }
  0x17   :  { %29 = vsyncpa [#allocation5], 0  ;;  %s2542_s21 = smov 0   ;;  %s2544_s22 = smov 0  }
  0x18   :  { %s2546_s23 = smov 0   ;;  %s2548_s24 = smov 0  }
  0x19 LB: > { %2978 = sst [smem:[#allocation21_spill]] %s2436_s23  ;;  %s2561_s25 = sadd.s32 4294967295, %s2440_s24   ;;  %s2440_s24 = sphi %s2548_s24, %s3010_s24   ;;  %s2436_s23 = sphi %s2546_s23, %s3012_s23   ;;  %s2432_s22 = sphi %s2544_s22, %s3014_s22   ;;  %s2428_s21 = sphi %s2542_s21, %s3013_s21  }
  0x1a   : > { %p165_p0 = scmp.ne.s32.totalorder %s2432_s22, %s2428_s21  ;;  %p166_p1 = scmp.eq.s32.totalorder %s2561_s25, 0 }
  0x1b   : > { %p1836_p2 = scmp.ge.s32.totalorder %s2440_s24, 1  ;;  %p457_p3 = scmp.lt.s32.totalorder %s2440_s24, 3 }
  0x1c   : > { %p1837_p4 = scmp.ne.s32.totalorder %s2561_s25, 0  ;;  %p2570_p5 = por %p166_p1, %p165_p0 }
  0x1d   : > { %s2980_s2 = sld [smem:[#allocation26_spill]]  ;;  %p2577_p6 = pnand %p1836_p2, %p457_p3 }
  0x1e   : > { %s2442_s0 = smov [#allocation6]   ;;  %s2590_s19 = sadd.s32 1, %s2440_s24  }
  0x1f   : > { %p2023_p7 = pneg %p2577_p6  ;;  %s488_s17 = sshll.u32 %s2442_s0, 4  ;;  %s489_s17 = int_to_ptr.vmem [resolvable:$true] %s488_s17 }
  0x20   : > { %2983 = sst [smem:[#allocation22_spill]] %s2590_s19  ;;  %s152_s20 = sadd.s32 1, %s2436_s23 }
  0x21   : > { %p2585_p8 = pnand %p2023_p7, %p166_p1  ;;  %s149_s21 = ssub.s32 %s2440_s24, %s2590_s19 }
  0x22   : > { %p150_p9 = scmp.eq.s32.totalorder %s149_s21, 0  ;;  %p159_p10 = scmp.ne.s32.totalorder %s2436_s23, %s2432_s22 }
  0x23   : > { %s486_s29 = sshll.u32 %s2980_s2, 4  ;;  %p160_p11 = scmp.eq.s32.totalorder %s2440_s24, 0  ;;  %s487_s29 = int_to_ptr.hbm [resolvable:$true] %s486_s29 }
  0x24   : > { %2029 = dma.hbm_to_vmem [thread:$0]  (!%p2585_p8), %s487_s29, 16, %s489_s17, [#allocation7]  }
  0x25   : > { %p2049_p12 = scmp.lt.s32.totalorder %s2440_s24, 2  ;;  %p161_p13 = por %p160_p11, %p159_p10 }
  0x26   : > { %s2602_s27 = scalar_select %p150_p9, %s2436_s23, %s152_s20  }
  0x27   : > { %s2606_s0 = sand.u32 1, %s2436_s23   ;;  %s1842_s16 = sshll.u32 %s2440_s24, 1 }
  0x28   : > { %2984 = sst [smem:[#allocation23_spill]] %s2602_s27  ;;  %s1841_s2 = sshll.u32 %s2606_s0, 1 }
  0x29   : > { %s2985_s5 = sld [smem:[#allocation29_spill]]  ;;  %s523_s21 = scalar_lea.vmem [#allocation9], %s1841_s2 }
  0x2a   : > { %s531_s15 = sshll.u32 %s523_s21, 4  ;;  %p2615_p0 = pnand %p2049_p12, %p161_p13  ;;  %s532_s15 = int_to_ptr.vmem [resolvable:$true] %s531_s15 }
  0x2b   : > { %s1843_s28 = sshll.u32 %s2606_s0, 5  ;;  %s1971_s27 = sshll.u32 %s2440_s24, 5 }
  0x2c   : > { %s2987_s23 = sand.u32 1, %s2440_s24   ;;  %p2186_p3 = pneg %p2615_p0 }
  0x2d   : > { %s2623_s13 = scalar_lea.sflag [#allocation10], %s2987_s23 }
  0x2f   : > { %s527_s29 = scalar_lea.hbm %s2985_s5, %s1842_s16  ;;  %s2189_s19 = scalar_lea.hbm %s2985_s5, 4 }
  0x30   : > { %s529_s17 = sshll.u32 %s527_s29, 4  ;;  %s530_s17 = int_to_ptr.hbm [resolvable:$true] %s529_s17 }
  0x31   : > { %s2182_s12 = sshra.s32 %s530_s17, 4  ;;  %s2183_s12 = int_to_ptr.hbm [resolvable:$true] %s2182_s12 }
  0x32   : > { %s2184_s1 = scalar_lea.hbm %s2183_s12, 2  ;;  %p2190_p10 = scmp.lt.s32.totalorder %s2183_s12, %s2985_s5 }
  0x33   : > { %p2185_p2 = scmp.ne.s32.totalorder %s2183_s12, %s2184_s1  ;;  %p2191_p11 = scmp.lt.s32.totalorder %s2189_s19, %s2184_s1 }
  0x35   : > { %p2187_p7 = pnand %p2186_p3, %p2185_p2  ;;  %p2192_p12 = por %p2191_p11, %p2190_p10 }
  0x37   : > { %p2188_p9 = pneg %p2187_p7 }
  0x39   : > { %p2193_p13 = pnand %p2192_p12, %p2188_p9 }
  0x3b   : > { %2196 = shalt.err (!%p2193_p13)
}
  0x3c   : > { %2036 = dma.hbm_to_vmem [thread:$0]  (!%p2615_p0), %s530_s17, 32, %s532_s15, %s2623_s13  }
  0x3d   : > { %s2988_s10 = sld [smem:[#allocation34_spill]]  ;;  %s579_s2 = scalar_lea.vmem [#allocation12], %s1843_s28 }
  0x3e   : > { %s587_s16 = sshll.u32 %s579_s2, 4  ;;  %s2989_s19 = sld [smem:[#allocation24_spill]]  ;;  %s588_s16 = int_to_ptr.vmem [resolvable:$true] %s587_s16 }
  0x3f   : > { %s2990_s21 = sand.u32 1, %s2440_s24  }
  0x40   : > { %s2647_s5 = scalar_lea.sflag [#allocation13], %s2990_s21 }
  0x43   : > { %s584_s9 = scalar_lea.hbm %s2988_s10, %s1971_s27 }
  0x44   : > { %s585_s7 = sshll.u32 %s584_s9, 4  ;;  %s468_s29 = sshll.u32 %s2989_s19, 4  ;;  %s586_s7 = int_to_ptr.hbm [resolvable:$true] %s585_s7  ;;  %s469_s29 = int_to_ptr.hbm [resolvable:$true] %s468_s29 }
  0x45   : > { %s2212_s6 = sshra.s32 %s586_s7, 4  ;;  %s2219_s9 = scalar_lea.hbm %s2988_s10, 64  ;;  %s2213_s6 = int_to_ptr.hbm [resolvable:$true] %s2212_s6 }
  0x46   : > { %s2214_s4 = scalar_lea.hbm %s2213_s6, 32  ;;  %p2220_p10 = scmp.lt.s32.totalorder %s2213_s6, %s2988_s10 }
  0x47   : > { %p2215_p2 = scmp.ne.s32.totalorder %s2213_s6, %s2214_s4  ;;  %p2221_p11 = scmp.lt.s32.totalorder %s2219_s9, %s2214_s4 }
  0x49   : > { %p2217_p7 = pnand %p2215_p2, %p2186_p3  ;;  %p2222_p12 = por %p2221_p11, %p2220_p10 }
  0x4b   : > { %p2218_p9 = pneg %p2217_p7 }
  0x4d   : > { %p2223_p13 = pnand %p2222_p12, %p2218_p9 }
  0x4f   : > { %2226 = shalt.err (!%p2223_p13)
}
  0x50   : > { %s2443_s17 = smov 64   ;;  %s2444_s23 = smov 4  }
  0x51   : > { %2042 = dma.hbm_to_vmem [thread:$0]  (!%p2615_p0), %s586_s7, 512, %s588_s16, %s2647_s5, %s2443_s17, %s2443_s17, %s2444_s23  }
  0x52   : > { %s2445_s2 = smov [#allocation3]   ;;  %s2446_s1 = smov 128  }
  0x53   : > { %s470_s12 = sshll.u32 %s2445_s2, 4  ;;  %s2447_s6 = smov 8   ;;  %s471_s12 = int_to_ptr.vmem [resolvable:$true] %s470_s12 }
  0x54   : > { %2026 = dma.hbm_to_vmem [thread:$0]  (!%p2585_p8), %s469_s29, 256, %s471_s12, [#allocation4], %s2446_s1, %s2446_s1, %s2447_s6  }
  0x55   : > { %s2991_s3 = sld [smem:[#allocation27_spill]]  ;;  %s2448_s11 = smov [#allocation8]  }
  0x56   : > { %s500_s15 = sshll.u32 %s2448_s11, 4  ;;  %s2992_s8 = sld [smem:[#allocation32_spill]]  ;;  %s501_s15 = int_to_ptr.vmem [resolvable:$true] %s500_s15 }
  0x57   : > { %s555_s27 = scalar_lea.vmem [#allocation11], %s2606_s0 }
  0x58   : > { %s562_s28 = sshll.u32 %s555_s27, 4  ;;  %s563_s28 = int_to_ptr.vmem [resolvable:$true] %s562_s28 }
  0x5b   : > { %s498_s21 = sshll.u32 %s2991_s3, 4  ;;  %s499_s21 = int_to_ptr.hbm [resolvable:$true] %s498_s21 }
  0x5c   : > { %2032 = dma.hbm_to_vmem [thread:$0]  (!%p2585_p8), %s499_s21, 16, %s501_s15, [#allocation7]  }
  0x5d   : > { %s558_s9 = scalar_lea.hbm %s2992_s8, %s2440_s24  ;;  %s2309_s12 = scalar_lea.hbm %s2992_s8, 2 }
  0x5e   : > { %s560_s17 = sshll.u32 %s558_s9, 4  ;;  %s561_s17 = int_to_ptr.hbm [resolvable:$true] %s560_s17 }
  0x5f   : > { %s2302_s29 = sshra.s32 %s561_s17, 4  ;;  %s2303_s29 = int_to_ptr.hbm [resolvable:$true] %s2302_s29 }
  0x60   : > { %s2304_s23 = scalar_lea.hbm %s2303_s29, 1  ;;  %p2310_p8 = scmp.lt.s32.totalorder %s2303_s29, %s2992_s8 }
  0x61   : > { %p2305_p2 = scmp.ne.s32.totalorder %s2303_s29, %s2304_s23  ;;  %p2311_p10 = scmp.lt.s32.totalorder %s2309_s12, %s2304_s23 }
  0x63   : > { %p2307_p7 = pnand %p2305_p2, %p2186_p3  ;;  %p2312_p11 = por %p2311_p10, %p2310_p8 }
  0x65   : > { %p2308_p9 = pneg %p2307_p7 }
  0x67   : > { %p2313_p12 = pnand %p2312_p11, %p2308_p9 }
  0x69   : > { %2316 = shalt.err (!%p2313_p12)
}
  0x6a   : > { %2039 = dma.hbm_to_vmem [thread:$0]  (!%p2615_p0), %s561_s17, 16, %s563_s28, %s2623_s13  }
  0x6b   : > { %s623_s21 = scalar_lea.hbm %s2956_s14, %s2440_s24  ;;  %s620_s11 = scalar_lea.vmem [#allocation14], %s2606_s0 }
  0x6c   : > { %s627_s15 = sshll.u32 %s620_s11, 4  ;;  %s625_s7 = sshll.u32 %s623_s21, 4  ;;  %s628_s15 = int_to_ptr.vmem [resolvable:$true] %s627_s15  ;;  %s626_s7 = int_to_ptr.hbm [resolvable:$true] %s625_s7 }
  0x6d   : > { %s2332_s16 = sshra.s32 %s626_s7, 4  ;;  %s2339_s13 = scalar_lea.hbm %s2956_s14, 2  ;;  %s2333_s16 = int_to_ptr.hbm [resolvable:$true] %s2332_s16 }
  0x6e   : > { %s2334_s9 = scalar_lea.hbm %s2333_s16, 1  ;;  %p2340_p9 = scmp.lt.s32.totalorder %s2333_s16, %s2956_s14 }
  0x6f   : > { %p2335_p13 = scmp.ne.s32.totalorder %s2333_s16, %s2334_s9  ;;  %p2341_p8 = scmp.lt.s32.totalorder %s2339_s13, %s2334_s9 }
  0x71   : > { %p2337_p2 = pnand %p2335_p13, %p2186_p3  ;;  %p2342_p10 = por %p2341_p8, %p2340_p9 }
  0x73   : > { %p2338_p7 = pneg %p2337_p2 }
  0x75   : > { %p2343_p11 = pnand %p2342_p10, %p2338_p7 }
  0x77   : > { %2346 = shalt.err (!%p2343_p11)
}
  0x78   : > { %2045 = dma.hbm_to_vmem [thread:$0]  (!%p2615_p0), %s626_s7, 16, %s628_s15, %s2647_s5  }
  0x79   : > { %642 = sbr.rel (%p2577_p6) target bundleno = 2348 (0x92c), region = 84 }
  0x7e   : > { %2407 = dma.done.wait (%p166_p1), [#allocation4], 256  }
  0x7f   : > { %2409 = vsyncadd (%p166_p1), [#allocation4], 4294967040 }
  0x80   : > { %2411 = dma.done.wait (%p166_p1), [#allocation7], 32  }
  0x81   : > { %2413 = vsyncadd (%p166_p1), [#allocation7], 4294967264  ;;  %s659_s24 = sand.u32 1, %s2561_s25   ;;  %s2714_s5 = sand.u32 1, %s2432_s22  }
  0x82   : > { %s1850_s30 = sshll.u32 %s2714_s5, 1  ;;  %s660_s0 = scalar_lea.sflag [#allocation10], %s659_s24 }
  0x83   : > { %s2717_s20 = scalar_lea.vmem [#allocation9], %s1850_s30 }
  0x84   : > { %2415 = dma.done.wait (%p2570_p5), %s660_s0, 48  }
  0x85   : > { %2417 = vsyncadd (%p2570_p5), %s660_s0, 4294967248  ;;  %s1851_s23 = sshll.u32 %s2714_s5, 5  ;;  %s679_s18 = scalar_lea.sflag [#allocation13], %s659_s24 }
  0x86   : > { %s2725_s12 = scalar_lea.vmem [#allocation12], %s1851_s23 }
  0x87   : > { %2419 = dma.done.wait (%p2570_p5), %s679_s18, 528  }
  0x88   : > { %2421 = vsyncadd (%p2570_p5), %s679_s18, 4294966768  ;;  %p779_p1 = scmp.lt.s32.totalorder %s2561_s25, 1  ;;  %s2993_s11 = sld [smem:[#allocation28_spill]] }
  0x89   : > { %s2994_s16 = sld [smem:[#allocation30_spill]]  ;;  %s691_s28 = scalar_lea.vmem [#allocation14], %s2714_s5 }
  0x8a   : > { %s2733_s1 = scalar_select %p779_p1, %s2561_s25, 1 }
  0x8b   : > { %s2996_s30 = sld [smem:[#allocation33_spill]] }
  0x8c   : > { %s1972_s6 = sshll.u32 %s2733_s1, 6  ;;  %s1973_s4 = sshll.u32 %s2733_s1, 5 }
  0x8d   : > { %s2997_s2 = sld [smem:[#allocation35_spill]] }
  0x8e   : > { %s2740_s26 = scalar_lea.vmem %s2993_s11, %s1972_s6  ;;  %s2998_s11 = sld [smem:[#allocation36_spill]] }
  0x8f   : > { %s2745_s9 = scalar_lea.vmem %s2994_s16, %s1973_s4  ;;  %s2999_s7 = sld [smem:[#allocation37_spill]] }
  0x90   : > { %s3000_s29 = sld [smem:[#allocation38_spill]] }
  0x91   : > { %s794_s0 = scalar_lea.vmem %s2996_s30, %s2733_s1 }
  0x92   : > { %813 = sbr.rel (%p1837_p4) target bundleno = 429 (0x1ad), region = 116 }
  0x93   : > { %s797_s3 = scalar_lea.vmem %s2997_s2, %s2733_s1 }
  0x94   : > { %s2762_s8 = scalar_lea.vmem %s2998_s11, %s1972_s6 }
  0x95   : > { %s805_s16 = scalar_lea.vmem %s2999_s7, %s2733_s1 }
  0x96   : > { %s808_s13 = scalar_lea.vmem %s3000_s29, %s2733_s1 }
  0x97   : > { %v814_v0 = vld [vmem:[#allocation3] sm:$0xff]  ;;  %vm818_vm0 = vcmask 523264   ;;  %v815_v2 = vld [vmem:[#allocation3 + $0x8] sm:$0xff]  ;;  %v2449_v4 = vmov 64.0   ;;  %v2102_v35 = vld [vmem:[#allocation6] ss:$0 sm:$0xff] }
  0x98   : > { %v819_v1 = vsel %vm818_vm0, %v814_v0, 0.0  ;;  %v822_v3 = vsel %vm818_vm0, %v815_v2, 0.0  ;;  %2104 = vrcp.f32 %v2449_v4  ;;  %v2103_v38 = vld [vmem:[#allocation8] ss:$0 sm:$0xff] }
  0x99   : > { %820 = vadd.xlane.f32.xlu0 %v819_v1 }
  0x9e   : > { %v2105_v5 = vpop.eup %2104 }
  0x9f   : > { %v826_v6 = vmul.f32 64.0, %v2105_v5  ;;  %vm830_vm1 = vweird.f32 %v2105_v5 }
  0xa1   : > { %823 = vadd.xlane.f32.xlu0 %v822_v3  ;;  %v827_v7 = vsub.f32 1.0, %v826_v6 }
  0xa3   : > { %v828_v8 = vmul.f32 %v2105_v5, %v827_v7 }
  0xa5   : > { %v829_v9 = vadd.f32 %v2105_v5, %v828_v8 }
  0xa7   : > { %v831_v10 = vsel %vm830_vm1, %v2105_v5, %v829_v9 }
 0x10c   : > { %v821_v11 = vpop.xlane.xlu0 %820 }
 0x10d   : > { %v832_v12 = vmul.f32 %v831_v10, %v821_v11 }
 0x10f   : > { %v834_v13 = vsub.f32 %v814_v0, %v832_v12 }
 0x111   : > { %v836_v14 = vmul.f32 %v834_v13, %v834_v13 }
 0x113   : > { %v838_v15 = vsel %vm818_vm0, %v836_v14, 0.0 }
 0x114   : > { %839 = vadd.xlane.f32.xlu1 %v838_v15  ;;  %v824_v16 = vpop.xlane.xlu0 %823 }
 0x115   : > { %v833_v17 = vmul.f32 %v831_v10, %v824_v16 }
 0x117   : > { %v835_v18 = vsub.f32 %v815_v2, %v833_v17 }
 0x119   : > { %v837_v19 = vmul.f32 %v835_v18, %v835_v18 }
 0x11b   : > { %v841_v20 = vsel %vm818_vm0, %v837_v19, 0.0 }
 0x11c   : > { %842 = vadd.xlane.f32.xlu1 %v841_v20 }
 0x187   : > { %v840_v21 = vpop.xlane.xlu1 %839 }
 0x188   : > { %v844_v22 = vmul.f32 %v840_v21, %v831_v10 }
 0x18a   : > { %v846_v23 = vadd.f32 1e-05, %v844_v22 }
 0x18c   : > { %2106 = vrsqrt.f32 %v846_v23  ;;  %vm854_vm3 = vweird.f32 %v846_v23 }
 0x18f   : > { %v843_v24 = vpop.xlane.xlu1 %842 }
 0x190   : > { %v845_v25 = vmul.f32 %v843_v24, %v831_v10 }
 0x192   : > { %v2107_v26 = vpop.eup %2106  ;;  %v847_v27 = vadd.f32 1e-05, %v845_v25 }
 0x193   : > { %v849_v28 = vmul.f32 %v2107_v26, %v846_v23  ;;  %vm855_vm2 = vweird.f32 %v2107_v26 }
 0x194   : > { %2108 = vrsqrt.f32 %v847_v27  ;;  %vm856_vm4 = vmor %vm854_vm3, %vm855_vm2  ;;  %vm864_vm6 = vweird.f32 %v847_v27 }
 0x195   : > { %v850_v29 = vmul.f32 %v2107_v26, %v849_v28 }
 0x197   : > { %v851_v30 = vmul.f32 0.5, %v850_v29 }
 0x199   : > { %v852_v31 = vsub.f32 1.5, %v851_v30 }
 0x19a   : > { %v2109_v32 = vpop.eup %2108 }
 0x19b   : > { %v853_v33 = vmul.f32 %v2107_v26, %v852_v31  ;;  %v859_v34 = vmul.f32 %v2109_v32, %v847_v27  ;;  %vm865_vm5 = vweird.f32 %v2109_v32 }
 0x19c   : > { %vm866_vm7 = vmor %vm864_vm6, %vm865_vm5 }
 0x19d   : > { %v857_v36 = vsel %vm856_vm4, %v2107_v26, %v853_v33  ;;  %v860_v37 = vmul.f32 %v2109_v32, %v859_v34 }
 0x19e   : > { %v868_v39 = vmul.f32 %v857_v36, %v834_v13 }
 0x19f   : > { %v861_v40 = vmul.f32 0.5, %v860_v37 }
 0x1a0   : > { %v873_v41 = vmul.f32 %v2102_v35, %v868_v39 }
 0x1a1   : > { %v862_v42 = vsub.f32 1.5, %v861_v40 }
 0x1a2   : > { %v878_v43 = vadd.f32 %v2103_v38, %v873_v41 }
 0x1a3   : > { %v863_v44 = vmul.f32 %v2109_v32, %v862_v42 }
 0x1a4   : > { %880 = vst.msk [vmem:[#allocation2] sm:$0xff] %vm818_vm0, %v878_v43 }
 0x1a5   : > { %v867_v45 = vsel %vm866_vm7, %v2109_v32, %v863_v44 }
 0x1a6   : > { %v869_v46 = vmul.f32 %v867_v45, %v835_v18 }
 0x1a8   : > { %v874_v47 = vmul.f32 %v2102_v35, %v869_v46 }
 0x1aa   : > { %v879_v48 = vadd.f32 %v2103_v38, %v874_v47 }
 0x1ac   : > { %881 = vst.msk [vmem:[#allocation2 + $0x8] sm:$0xff] %vm818_vm0, %v879_v48 }
 0x1ad PF: > { %v1885_v49 = vld [vmem:[%s2740_s26 + $0x30] sm:$0xf]  ;;  %v1982_v50 = vld [vmem:[%s2740_s26 + $0x34] sm:$0xf0]  ;;  %v1877_v51 = vld [vmem:[%s2740_s26 + $0x20] sm:$0xf] }
 0x1ae   : > { %v1886_v52 = vor.u32 %v1982_v50, %v1885_v49  ;;  %v1980_v53 = vld [vmem:[%s2740_s26 + $0x24] sm:$0xf0]  ;;  %v1869_v55 = vld [vmem:[%s2740_s26 + $0x10] sm:$0xf]  ;;  %v1978_v56 = vld [vmem:[%s2740_s26 + $0x14] sm:$0xf0] }
 0x1af   : > { %v1878_v54 = vor.u32 %v1980_v53, %v1877_v51  ;;  %v1870_v57 = vor.u32 %v1978_v56, %v1869_v55  ;;  %v1861_v58 = vld [vmem:[%s2740_s26] sm:$0xf]  ;;  %v1976_v59 = vld [vmem:[%s2740_s26 + $0x4] sm:$0xf0]  ;;  %vm939_vm8 = vcmask 523264   ;;  %s2450_s10 = smov 96  }
 0x1b0   : > { %947 = vmatpush.bf16.msra.mxu0 %v1886_v52  ;;  %v1862_v60 = vor.u32 %v1976_v59, %v1861_v58  ;;  %v2789_v61 = vld [vmem:[#allocation2] sm:$0xff]  ;;  %s2451_s2 = smov 64   ;;  %s2452_s6 = smov 32   ;;  %vm977_vm9 = vcmask 261120   ;;  %v1981_v18 = vld [vmem:[%s2740_s26 + $0x34] sm:$0xf] }
 0x1b1   : > { %v2797_v0 = vld [vmem:[%s2717_s20] sm:$0x3]  ;;  %v1887_v19 = vld [vmem:[%s2740_s26 + $0x38] sm:$0xf0]  ;;  %v1879_v22 = vld [vmem:[%s2740_s26 + $0x28] sm:$0xf0] }
 0x1b2   : > { %v895_v1 = vperm.slane %v2797_v0, 0  ;;  %v1979_v20 = vld [vmem:[%s2740_s26 + $0x24] sm:$0xf]  ;;  %v1890_v21 = vor.u32 %v1981_v18, %v1887_v19  ;;  %v1977_v24 = vld [vmem:[%s2740_s26 + $0x14] sm:$0xf]  ;;  %s3001_s24 = sld [smem:[#allocation25_spill]] }
 0x1b3   : > { %v2791_v62 = vld [vmem:[#allocation2 + $0x8] sm:$0xff]  ;;  %v1882_v23 = vor.u32 %v1979_v20, %v1879_v22  ;;  %v1871_v25 = vld [vmem:[%s2740_s26 + $0x18] sm:$0xf0]  ;;  %v1975_v28 = vld [vmem:[%s2740_s26 + $0x4] sm:$0xf]  ;;  %vm1000_vm10 = vcmask 64512  }
 0x1b4   : > { %948 = vmatpush.bf16.msra.mxu0 %v1878_v54  ;;  %v884_v63 = vpack.c.bf16 %v2791_v62, %v2789_v61  ;;  %961 = vmatpush.bf16.msra.mxu1 %v1890_v21  ;;  %v1874_v27 = vor.u32 %v1977_v24, %v1871_v25  ;;  %v1863_v29 = vld [vmem:[%s2740_s26 + $0x8] sm:$0xf0]  ;;  %v896_v53 = vperm.slane %v2797_v0, 1  ;;  %vm1029_vm11 = vcmask 1043456   ;;  %s3002_s23 = sld [smem:[#allocation31_spill]]  ;;  %p2053_p4 = scmp.eq.s32.totalorder %s2561_s25, 1 }
 0x1b5   : > { %v1866_v30 = vor.u32 %v1975_v28, %v1863_v29 }
 0x1b8   : > { %949 = vmatpush.bf16.msra.mxu0 %v1870_v57  ;;  %962 = vmatpush.bf16.msra.mxu1 %v1882_v23  ;;  %v971_v32 = vld [vmem:[%s3001_s24] sm:$0x3] }
 0x1b9   : > { %v998_v33 = vperm.slane %v971_v32, 0  ;;  %v1148_v44 = vperm.slane %v971_v32, 1 }
 0x1ba   : > { %s3003_s18 = scalar_lea.vmem %s3002_s23, %s2733_s1 }
 0x1bc   : > { %950 = vmatpush.bf16.msra.mxu0 %v1862_v60  ;;  %963 = vmatpush.bf16.msra.mxu1 %v1874_v27 }
 0x1bf   : > { %1891 = vmatmul.msk.bf16.vlgmr.msra.gmra.mxu0 %vm939_vm8, %v884_v63 }
 0x1c0   : > { %964 = vmatpush.bf16.msra.mxu1 %v1866_v30 }
 0x1c3   : > { %1892 = vmatmul.msk.bf16.vlgmr.msra.gmra.mxu1 %vm939_vm8, %v884_v63 }
 0x23c   : > { %v952_v2 = vpop.f32.mrf.mxu0 }
 0x23d   : > { %v953_v3 = vadd.f32 %v952_v2, %v895_v1 }
 0x23f   : > { %v972_v4 = vpack.c.bf16 %v953_v3, %v953_v3 }
 0x240   : > { %v966_v55 = vpop.f32.mrf.mxu1 }
 0x241   : > { %1046 = vrot.lane.b32.xlu1 %v972_v4, %s2450_s10  ;;  %975 = vrot.lane.b32.xlu0 %v972_v4, %s2451_s2  ;;  %v967_v58 = vadd.f32 %v966_v55, %v896_v53 }
 0x243   : > { %v973_v59 = vpack.c.bf16 %v967_v58, %v967_v58 }
 0x244   : > { %v954_v5 = vpop.f32.mrf.mxu0 }
 0x245   : > { %v955_v6 = vadd.f32 %v954_v5, %v895_v1  ;;  %v1031_v5 = vsel %vm1029_vm11, %v973_v59, 0 }
 0x247   : > { %v1123_v7 = vpack.c.bf16 %v955_v6, %v955_v6 }
 0x248   : > { %v968_v60 = vpop.f32.mrf.mxu1 }
 0x249   : > { %1194 = vrot.lane.b32.xlu2 %v1123_v7, %s2450_s10  ;;  %1196 = vrot.lane.b32.xlu1 %v1123_v7, %s2452_s6  ;;  %v969_v1 = vadd.f32 %v968_v60, %v896_v53 }
 0x24a   : > { %1048 = vrot.lane.b32.xlu0 %v972_v4, %s2452_s6 }
 0x251   : > { %1126 = vrot.lane.b32.xlu2 %v1123_v7, %s2451_s2  ;;  %s2455_s2 = smov 128  }
 0x2a3   : > { %v1195_v8 = vpop.permute.xlu2 %1194 }
 0x2ab   : > { %v1127_v9 = vpop.permute.xlu2 %1126 }
 0x2ac   : > { %v1132_v10 = vsel %vm977_vm9, %v1127_v9, 0 }
 0x2ad   : > { %1141 = vmatpush.bf16.xpose.msrb.mxu0 %v1132_v10 }
 0x2b3   : > { %v1047_v11 = vpop.permute.xlu1 %1046  ;;  %v976_v12 = vpop.permute.xlu0 %975 }
 0x2b4   : > { %1897 = vmatmul.msk.bf16.vlgmr.msrb.gmra.mxu0 %vm977_vm9, %v1123_v7  ;;  %v982_v13 = vsel %vm977_vm9, %v976_v12, 0 }
 0x2b5   : > { %991 = vmatpush.bf16.xpose.msra.mxu2 %v982_v13 }
 0x2bb   : > { %v1197_v14 = vpop.permute.xlu1 %1196 }
 0x2bc   : > { %v1049_v15 = vpop.permute.xlu0 %1048  ;;  %1893 = vmatmul.msk.bf16.vlgmr.msra.gmra.mxu2 %vm977_vm9, %v972_v4  ;;  %v1202_v16 = vsel %vm977_vm9, %v1197_v14, 0  ;;  %v1124_v4 = vpack.c.bf16 %v969_v1, %v969_v1 }
 0x2bd   : > { %v1054_v17 = vsel %vm977_vm9, %v1049_v15, 0  ;;  %1040 = vmatpush.bf16.msrb.mxu2 %v1031_v5 }
 0x2be   : > { %1063 = vmatpush.bf16.xpose.msra.mxu3 %v1054_v17  ;;  %v1179_v0 = vsel %vm1029_vm11, %v1124_v4, 0 }
 0x2bf   : > { %1188 = vmatpush.bf16.msrb.mxu1 %v1179_v0 }
 0x2c5   : > { %1895 = vmatmul.msk.bf16.vlgmr.msra.gmra.mxu3 %vm977_vm9, %v1047_v11 }
 0x2c6   : > { %1211 = vmatpush.bf16.xpose.msrb.mxu3 %v1202_v16 }
 0x2d5   : > { %1899 = vmatmul.msk.bf16.vlgmr.msrb.gmra.mxu3 %vm977_vm9, %v1195_v8 }
 0x331   : > { %v1143_v26 = vpop.f32.mrf.mxu0 }
 0x332   : > { %v1147_v42 = vmul.f32 0.17677669, %v1143_v26 }
 0x334   : > { %v1149_v46 = vadd.f32 %v1148_v44, %v1147_v42 }
 0x336   : > { %v1150_v47 = vsel %vm1000_vm10, %v1149_v46, -inf }
 0x339   : > { %v1145_v31 = vpop.f32.mrf.mxu0 }
 0x33f   : > { %v993_v34 = vpop.f32.mrf.mxu2 }
 0x340   : > { %v997_v35 = vmul.f32 0.17677669, %v993_v34 }
 0x342   : > { %v999_v36 = vadd.f32 %v998_v33, %v997_v35 }
 0x344   : > { %v1001_v37 = vsel %vm1000_vm10, %v999_v36, -inf }
 0x345   : > { %1002 = vmax.xlane.f32.xlu0 %v1001_v37 }
 0x347   : > { %v995_v38 = vpop.f32.mrf.mxu2 }
 0x348   : > { %v1065_v39 = vpop.f32.mrf.mxu3 }
 0x349   : > { %v1069_v40 = vmul.f32 0.17677669, %v1065_v39 }
 0x34b   : > { %v1070_v41 = vadd.f32 %v1069_v40, %v998_v33 }
 0x34d   : > { %v1071_v43 = vsel %vm1000_vm10, %v1070_v41, -inf }
 0x34e   : > { %1072 = vmax.xlane.f32.xlu1 %v1071_v43 }
 0x350   : > { %v1067_v45 = vpop.f32.mrf.mxu3 }
 0x356   : > { %1151 = vmax.xlane.f32.xlu1 %v1150_v47 }
 0x358   : > { %v1213_v48 = vpop.f32.mrf.mxu3 }
 0x359   : > { %v1217_v49 = vmul.f32 0.17677669, %v1213_v48 }
 0x35b   : > { %v1218_v50 = vadd.f32 %v1217_v49, %v1148_v44 }
 0x35d   : > { %v1219_v51 = vsel %vm1000_vm10, %v1218_v50, -inf }
 0x35e   : > { %1220 = vmax.xlane.f32.xlu2 %v1219_v51 }
 0x360   : > { %v1215_v52 = vpop.f32.mrf.mxu3 }
 0x36f   : > { %1245 = vrot.lane.b32.xlu1 %v1124_v4, %s2450_s10 }
 0x3b8   : > { %v1003_v54 = vpop.xlane.xlu0 %1002 }
 0x3b9   : > { %v1004_v56 = vsub.f32 %v999_v36, %v1003_v54 }
 0x3bb   : > { %v1005_v57 = vmul.f32 1.442695, %v1004_v56 }
 0x3bd   : > { %2122 = vpow2.f32 %v1005_v57 }
 0x3c1   : > { %v1073_v63 = vpop.xlane.xlu1 %1072 }
 0x3c2   : > { %v1074_v2 = vsub.f32 %v1070_v41, %v1073_v63 }
 0x3c3   : > { %v2123_v3 = vpop.eup %2122 }
 0x3c4   : > { %v1075_v6 = vmul.f32 1.442695, %v1074_v2  ;;  %v1007_v7 = vsel %vm1000_vm10, %v2123_v3, 0.0 }
 0x3c5   : > { %1008 = vadd.xlane.f32.xlu2 %v1007_v7 }
 0x3c6   : > { %2124 = vpow2.f32 %v1075_v6 }
 0x3c9   : > { %v1152_v10 = vpop.xlane.xlu1 %1151 }
 0x3ca   : > { %v1153_v13 = vsub.f32 %v1149_v46, %v1152_v10 }
 0x3cc   : > { %v2125_v8 = vpop.eup %2124  ;;  %v1154_v15 = vmul.f32 1.442695, %v1153_v13 }
 0x3cd   : > { %v1077_v9 = vsel %vm1000_vm10, %v2125_v8, 0.0 }
 0x3ce   : > { %1078 = vadd.xlane.f32.xlu0 %v1077_v9 }
 0x3d1   : > { %v1221_v11 = vpop.xlane.xlu2 %1220 }
 0x3d2   : > { %v1222_v12 = vsub.f32 %v1218_v50, %v1221_v11 }
 0x3d4   : > { %v1223_v14 = vmul.f32 1.442695, %v1222_v12 }
 0x3d6   : > { %2126 = vpow2.f32 %v1223_v14 }
 0x3d7   : > { %2128 = vpow2.f32 %v1154_v15 }
 0x3dc   : > { %v2834_v16 = vpop.eup %2126 }
 0x3dd   : > { %v1225_v17 = vsel %vm1000_vm10, %v2834_v16, 0.0  ;;  %v2838_v18 = vpop.eup %2128 }
 0x3de   : > { %1226 = vadd.xlane.f32.xlu2 %v1225_v17  ;;  %v1156_v19 = vsel %vm1000_vm10, %v2838_v18, 0.0  ;;  %v1986_v17 = vld [vmem:[%s2745_s9 + $0x18] sm:$0xff] }
 0x3df   : > { %1315 = vmatpush.bf16.msra.mxu0 %v1986_v17 }
 0x3e1   : > { %v1246_v42 = vpop.permute.xlu1 %1245 }
 0x3e2   : > { %1097 = vrot.lane.b32.xlu0 %v973_v59, %s2450_s10  ;;  %v1251_v45 = vsel %vm1029_vm11, %v1246_v42, 0  ;;  %v2453_v42 = vmov 64.0  }
 0x3e6   : > { %1157 = vadd.xlane.f32.xlu2 %v1156_v19  ;;  %v1984_v19 = vld [vmem:[%s2745_s9 + $0x8] sm:$0xff] }
 0x438   : > { %v1009_v20 = vpop.xlane.xlu2 %1008 }
 0x439   : > { %2130 = vrcp.f32 %v1009_v20  ;;  %v1021_v25 = vand.u32 2147483648, %v1009_v20  ;;  %v1019_v27 = vand.u32 2147483647, %v1009_v20  ;;  %vm1015_vm13 = vweird.f32 %v1009_v20 }
 0x43b   : > { %v1022_v29 = vor.u32 1.1754944e-38, %v1021_v25  ;;  %vm1020_vm15 = vcmp.eq.f32.partialorder %v1019_v27, 8.507059e+37 }
 0x43f   : > { %v2131_v21 = vpop.eup %2130 }
 0x440   : > { %v1011_v22 = vmul.f32 %v2131_v21, %v1009_v20  ;;  %vm1016_vm12 = vweird.f32 %v2131_v21 }
 0x441   : > { %v1079_v23 = vpop.xlane.xlu0 %1078  ;;  %vm1017_vm14 = vmor %vm1015_vm13, %vm1016_vm12 }
 0x442   : > { %v1012_v24 = vsub.f32 1.0, %v1011_v22  ;;  %2132 = vrcp.f32 %v1079_v23  ;;  %v1091_v39 = vand.u32 2147483648, %v1079_v23  ;;  %vm1085_vm1 = vweird.f32 %v1079_v23 }
 0x443   : > { %v1089_v40 = vand.u32 2147483647, %v1079_v23 }
 0x444   : > { %v1013_v26 = vmul.f32 %v2131_v21, %v1012_v24  ;;  %v1092_v44 = vor.u32 1.1754944e-38, %v1091_v39 }
 0x445   : > { %vm1090_vm3 = vcmp.eq.f32.partialorder %v1089_v40, 8.507059e+37 }
 0x446   : > { %v1014_v28 = vadd.f32 %v2131_v21, %v1013_v26  ;;  %v1983_v26 = vld [vmem:[%s2745_s9] sm:$0xff] }
 0x448   : > { %v2133_v30 = vpop.eup %2132  ;;  %v1018_v31 = vsel %vm1017_vm14, %v2131_v21, %v1014_v28 }
 0x449   : > { %v1081_v32 = vmul.f32 %v2133_v30, %v1079_v23  ;;  %v1023_v33 = vsel %vm1020_vm15, %v1022_v29, %v1018_v31  ;;  %vm1086_vm0 = vweird.f32 %v2133_v30 }
 0x44a   : > { %v1024_v34 = vmul.f32 %v2123_v3, %v1023_v33  ;;  %vm1087_vm2 = vmor %vm1085_vm1, %vm1086_vm0  ;;  %v2115_v33 = vld [vmem:[%s3003_s18] ss:$0 sm:$0xff] }
 0x44b   : > { %v1082_v35 = vsub.f32 1.0, %v1081_v32 }
 0x44c   : > { %v1025_v36 = vpack.c.bf16 %v1024_v34, %v1024_v34 }
 0x44d   : > { %v1083_v37 = vmul.f32 %v2133_v30, %v1082_v35 }
 0x44e   : > { %1894 = vmatmul.msk.bf16.vlgmr.msrb.gmra.mxu2 %vm1000_vm10, %v1025_v36 }
 0x44f   : > { %v1084_v38 = vadd.f32 %v2133_v30, %v1083_v37 }
 0x451   : > { %v1227_v41 = vpop.xlane.xlu2 %1226  ;;  %v1088_v43 = vsel %vm1087_vm2, %v2133_v30, %v1084_v38 }
 0x452   : > { %2134 = vrcp.f32 %v1227_v41  ;;  %v1093_v47 = vsel %vm1090_vm3, %v1092_v44, %v1088_v43  ;;  %v1239_v57 = vand.u32 2147483648, %v1227_v41  ;;  %vm1233_vm5 = vweird.f32 %v1227_v41 }
 0x453   : > { %v1094_v50 = vmul.f32 %v2125_v8, %v1093_v47  ;;  %v1237_v59 = vand.u32 2147483647, %v1227_v41 }
 0x454   : > { %v1098_v46 = vpop.permute.xlu0 %1097  ;;  %v1240_v1 = vor.u32 1.1754944e-38, %v1239_v57  ;;  %v1990_v57 = vld [vmem:[%s2725_s12 + $0x18] sm:$0xff] }
 0x455   : > { %v1103_v48 = vsel %vm1029_vm11, %v1098_v46, 0  ;;  %v1095_v54 = vpack.c.bf16 %v1094_v50, %v1094_v50  ;;  %vm1238_vm7 = vcmp.eq.f32.partialorder %v1237_v59, 8.507059e+37  ;;  %1434 = vmatpush.bf16.msra.mxu1 %v1990_v57 }
 0x456   : > { %1112 = vmatpush.bf16.msra.mxu2 %v1103_v48 }
 0x458   : > { %v2135_v49 = vpop.eup %2134 }
 0x459   : > { %v1229_v51 = vmul.f32 %v2135_v49, %v1227_v41  ;;  %v1158_v52 = vpop.xlane.xlu2 %1157  ;;  %vm1234_vm4 = vweird.f32 %v2135_v49 }
 0x45a   : > { %1260 = vmatpush.bf16.msrb.mxu2 %v1251_v45  ;;  %2136 = vrcp.f32 %v1158_v52  ;;  %vm1235_vm6 = vmor %vm1233_vm5, %vm1234_vm4  ;;  %v1170_v3 = vand.u32 2147483648, %v1158_v52  ;;  %v1168_v6 = vand.u32 2147483647, %v1158_v52  ;;  %vm1164_vm12 = vweird.f32 %v1158_v52 }
 0x45b   : > { %v1230_v53 = vsub.f32 1.0, %v1229_v51  ;;  %2138 = vrcp.f32 %v2453_v42 }
 0x45c   : > { %v1171_v8 = vor.u32 1.1754944e-38, %v1170_v3  ;;  %vm1169_vm14 = vcmp.eq.f32.partialorder %v1168_v6, 8.507059e+37 }
 0x45d   : > { %v1231_v55 = vmul.f32 %v2135_v49, %v1230_v53 }
 0x45e   : > { %1896 = vmatmul.msk.bf16.vlgmr.msra.gmra.mxu2 %vm1000_vm10, %v1095_v54 }
 0x45f   : > { %v1232_v56 = vadd.f32 %v2135_v49, %v1231_v55 }
 0x460   : > { %v2137_v58 = vpop.eup %2136 }
 0x461   : > { %v1160_v60 = vmul.f32 %v2137_v58, %v1158_v52  ;;  %v1236_v63 = vsel %vm1235_vm6, %v2135_v49, %v1232_v56  ;;  %vm1165_vm11 = vweird.f32 %v2137_v58  ;;  %v2139_v43 = vpop.eup %2138 }
 0x462   : > { %v1241_v4 = vsel %vm1238_vm7, %v1240_v1, %v1236_v63  ;;  %vm1166_vm13 = vmor %vm1164_vm12, %vm1165_vm11  ;;  %v1336_v44 = vmul.f32 64.0, %v2139_v43 }
 0x463   : > { %v1161_v2 = vsub.f32 1.0, %v1160_v60  ;;  %v1242_v0 = vmul.f32 %v2834_v16, %v1241_v4  ;;  %v1985_v16 = vld [vmem:[%s2745_s9 + $0x10] sm:$0xff] }
 0x464   : > { %1316 = vmatpush.bf16.msra.mxu0 %v1985_v16  ;;  %v1337_v45 = vsub.f32 1.0, %v1336_v44  ;;  %v1988_v60 = vld [vmem:[%s2725_s12 + $0x8] sm:$0xff] }
 0x465   : > { %v1162_v5 = vmul.f32 %v2137_v58, %v1161_v2  ;;  %v1243_v12 = vpack.c.bf16 %v1242_v0, %v1242_v0  ;;  %v1987_v2 = vld [vmem:[%s2725_s12] sm:$0xff] }
 0x466   : > { %v1338_v46 = vmul.f32 %v2139_v43, %v1337_v45 }
 0x467   : > { %v1163_v7 = vadd.f32 %v2137_v58, %v1162_v5 }
 0x468   : > { %1317 = vmatpush.bf16.msra.mxu0 %v1984_v19  ;;  %v1339_v47 = vadd.f32 %v2139_v43, %v1338_v46 }
 0x469   : > { %v1167_v9 = vsel %vm1166_vm13, %v2137_v58, %v1163_v7  ;;  %v1989_v58 = vld [vmem:[%s2725_s12 + $0x10] sm:$0xff]  ;;  %s3004_s12 = scalar_lea.vmem [#allocation11], %s2714_s5  ;;  %s2454_s5 = smov [#allocation15]  }
 0x46a   : > { %v1172_v10 = vsel %vm1169_vm14, %v1171_v8, %v1167_v9  ;;  %1435 = vmatpush.bf16.msra.mxu1 %v1989_v58  ;;  %v2116_v16 = vld [vmem:[%s3004_s12] ss:$0 sm:$0xff] }
 0x46b   : > { %v1173_v11 = vmul.f32 %v2838_v18, %v1172_v10 }
 0x46c   : > { %1318 = vmatpush.bf16.msra.mxu0 %v1983_v26 }
 0x46d   : > { %v1174_v13 = vpack.c.bf16 %v1173_v11, %v1173_v11 }
 0x46e   : > { %1900 = vmatmul.msk.bf16.vlgmr.msrb.gmra.mxu2 %vm1000_vm10, %v1243_v12  ;;  %1436 = vmatpush.bf16.msra.mxu1 %v1988_v60 }
 0x46f   : > { %1898 = vmatmul.msk.bf16.vlgmr.msrb.gmra.mxu1 %vm1000_vm10, %v1174_v13 }
 0x472   : > { %1437 = vmatpush.bf16.msra.mxu1 %v1987_v2 }
 0x4d1   : > { %v1042_v14 = vpop.f32.mrf.mxu2 }
 0x4d9   : > { %v1044_v15 = vpop.f32.mrf.mxu2 }
 0x4e1   : > { %v1114_v20 = vpop.f32.mrf.mxu2 }
 0x4e9   : > { %v1116_v21 = vpop.f32.mrf.mxu2 }
 0x4ec   : > { %v1190_v22 = vpop.f32.mrf.mxu1 }
 0x4f1   : > { %v1262_v18 = vpop.f32.mrf.mxu2 }
 0x4f2   : > { %v2110_v23 = vpack.i.bf16 %v1262_v18, %v1114_v20 }
 0x4f4   : > { %v1192_v24 = vpop.f32.mrf.mxu1  ;;  %2111 = vrot.lane.b32.xlu2 %v2110_v23, %s2452_s6  ;;  %s2456_s6 = smov 8  }
 0x4f9   : > { %v1264_v25 = vpop.f32.mrf.mxu2 }
 0x54e   : > { %v2112_v27 = vpop.permute.xlu2 %2111 }
 0x54f   : > { %v2114_v28 = vunpack.i.h.bf16 %v2112_v27  ;;  %v2113_v29 = vunpack.i.l.bf16 %v2112_v27 }
 0x551   : > { %v1270_v30 = vsel %vm977_vm9, %v1190_v22, %v2114_v28  ;;  %v1122_v31 = vsel %vm977_vm9, %v1042_v14, %v2113_v29  ;;  %vm1340_vm9 = vweird.f32 %v2139_v43  ;;  %v2117_v22 = vld [vmem:[%s794_s0] ss:$0 sm:$0xff]  ;;  %v1998_v28 = vld [vmem:[%s2762_s8 + $0x38] sm:$0xff]  ;;  %v1997_v29 = vld [vmem:[%s2762_s8 + $0x30] sm:$0xff] }
 0x552   : > { %v1271_v32 = vpack.c.bf16 %v1270_v30, %v1122_v31  ;;  %1531 = vmatpush.bf16.msra.mxu3 %v1998_v28  ;;  %v1996_v30 = vld [vmem:[%s2762_s8 + $0x28] sm:$0xff]  ;;  %v1995_v31 = vld [vmem:[%s2762_s8 + $0x20] sm:$0xff] }
 0x554   : > { %1917 = vmatmul.msk.bf16.vlgmr.msra.gmra.mxu0 %vm939_vm8, %v1271_v32  ;;  %v1994_v32 = vld [vmem:[%s2762_s8 + $0x18] sm:$0xff] }
 0x556   : > { %1532 = vmatpush.bf16.msra.mxu3 %v1997_v29 }
 0x55a   : > { %1533 = vmatpush.bf16.msra.mxu3 %v1996_v30  ;;  %v2120_v30 = vld [vmem:[%s691_s28] ss:$0 sm:$0xff]  ;;  %s1612_s28 = sshll.u32 %s2454_s5, 4  ;;  %s1613_s28 = int_to_ptr.vmem [resolvable:$true] %s1612_s28 }
 0x55e   : > { %1534 = vmatpush.bf16.msra.mxu3 %v1995_v31 }
 0x562   : > { %1535 = vmatpush.bf16.msra.mxu3 %v1994_v32 }
 0x5d1   : > { %v1320_v34 = vpop.f32.mrf.mxu0 }
 0x5d2   : > { %v1321_v35 = vadd.f32 %v2115_v33, %v1320_v34  ;;  %v1992_v34 = vld [vmem:[%s2762_s8 + $0x8] sm:$0xff] }
 0x5d4   : > { %v1325_v36 = vadd.f32 %v1321_v35, %v2789_v61  ;;  %v2868_v61 = vsel %vm1340_vm9, %v2139_v43, %v1339_v47  ;;  %v2118_v35 = vld [vmem:[%s797_s3] ss:$0 sm:$0xff] }
 0x5d6   : > { %v1329_v37 = vsel %vm939_vm8, %v1325_v36, 0.0 }
 0x5d7   : > { %1330 = vadd.xlane.f32.xlu0 %v1329_v37 }
 0x5d9   : > { %v1322_v38 = vpop.f32.mrf.mxu0 }
 0x5da   : > { %v1323_v39 = vadd.f32 %v2115_v33, %v1322_v38  ;;  %v1993_v33 = vld [vmem:[%s2762_s8 + $0x10] sm:$0xff] }
 0x5db   : > { %1536 = vmatpush.bf16.msra.mxu3 %v1993_v33 }
 0x5dc   : > { %v1326_v40 = vadd.f32 %v1323_v39, %v2791_v62 }
 0x5de   : > { %v1332_v41 = vsel %vm939_vm8, %v1326_v40, 0.0 }
 0x5df   : > { %1333 = vadd.xlane.f32.xlu1 %v1332_v41  ;;  %1537 = vmatpush.bf16.msra.mxu3 %v1992_v34 }
 0x64a   : > { %v1331_v48 = vpop.xlane.xlu0 %1330 }
 0x64b   : > { %v1342_v49 = vmul.f32 %v2868_v61, %v1331_v48 }
 0x64d   : > { %v1344_v62 = vsub.f32 %v1325_v36, %v1342_v49  ;;  %v1991_v36 = vld [vmem:[%s2762_s8] sm:$0xff] }
 0x64e   : > { %1538 = vmatpush.bf16.msra.mxu3 %v1991_v36 }
 0x64f   : > { %v1346_v50 = vmul.f32 %v1344_v62, %v1344_v62 }
 0x651   : > { %v1348_v51 = vsel %vm939_vm8, %v1346_v50, 0.0 }
 0x652   : > { %v1334_v52 = vpop.xlane.xlu1 %1333  ;;  %1349 = vadd.xlane.f32.xlu2 %v1348_v51 }
 0x653   : > { %v1343_v53 = vmul.f32 %v2868_v61, %v1334_v52 }
 0x655   : > { %v1345_v54 = vsub.f32 %v1326_v40, %v1343_v53 }
 0x657   : > { %v1347_v55 = vmul.f32 %v1345_v54, %v1345_v54 }
 0x659   : > { %v1351_v56 = vsel %vm939_vm8, %v1347_v55, 0.0 }
 0x65a   : > { %1352 = vadd.xlane.f32.xlu0 %v1351_v56 }
 0x6c5   : > { %v1350_v59 = vpop.xlane.xlu2 %1349 }
 0x6c6   : > { %v1354_v63 = vmul.f32 %v1350_v59, %v2868_v61  ;;  %v2119_v59 = vld [vmem:[%s805_s16] ss:$0 sm:$0xff] }
 0x6c8   : > { %v1356_v1 = vadd.f32 1e-05, %v1354_v63 }
 0x6ca   : > { %2140 = vrsqrt.f32 %v1356_v1  ;;  %vm1364_vm15 = vweird.f32 %v1356_v1 }
 0x6cd   : > { %v1353_v3 = vpop.xlane.xlu0 %1352 }
 0x6ce   : > { %v1355_v4 = vmul.f32 %v1353_v3, %v2868_v61 }
 0x6d0   : > { %v2141_v5 = vpop.eup %2140  ;;  %v1357_v6 = vadd.f32 1e-05, %v1355_v4 }
 0x6d1   : > { %v1359_v7 = vmul.f32 %v2141_v5, %v1356_v1  ;;  %vm1365_vm10 = vweird.f32 %v2141_v5 }
 0x6d2   : > { %2142 = vrsqrt.f32 %v1357_v6  ;;  %vm1366_vm0 = vmor %vm1364_vm15, %vm1365_vm10  ;;  %vm1374_vm2 = vweird.f32 %v1357_v6 }
 0x6d3   : > { %v1360_v0 = vmul.f32 %v2141_v5, %v1359_v7 }
 0x6d5   : > { %v1361_v8 = vmul.f32 0.5, %v1360_v0 }
 0x6d7   : > { %v1362_v9 = vsub.f32 1.5, %v1361_v8 }
 0x6d8   : > { %v2143_v10 = vpop.eup %2142 }
 0x6d9   : > { %v1363_v11 = vmul.f32 %v2141_v5, %v1362_v9  ;;  %v1369_v12 = vmul.f32 %v2143_v10, %v1357_v6  ;;  %vm1375_vm1 = vweird.f32 %v2143_v10 }
 0x6da   : > { %vm1376_vm3 = vmor %vm1374_vm2, %vm1375_vm1 }
 0x6db   : > { %v1370_v13 = vmul.f32 %v2143_v10, %v1369_v12  ;;  %v1367_v14 = vsel %vm1366_vm0, %v2141_v5, %v1363_v11 }
 0x6dc   : > { %v1378_v19 = vmul.f32 %v1367_v14, %v1344_v62 }
 0x6dd   : > { %v1371_v15 = vmul.f32 0.5, %v1370_v13 }
 0x6de   : > { %v1383_v18 = vmul.f32 %v2116_v16, %v1378_v19 }
 0x6df   : > { %v1372_v17 = vsub.f32 1.5, %v1371_v15 }
 0x6e0   : > { %v1388_v25 = vadd.f32 %v2117_v22, %v1383_v18 }
 0x6e1   : > { %v1373_v20 = vmul.f32 %v2143_v10, %v1372_v17 }
 0x6e3   : > { %v1377_v21 = vsel %vm1376_vm3, %v2143_v10, %v1373_v20 }
 0x6e4   : > { %v1379_v23 = vmul.f32 %v1377_v21, %v1345_v54 }
 0x6e6   : > { %v1384_v24 = vmul.f32 %v2116_v16, %v1379_v23 }
 0x6e8   : > { %v1389_v26 = vadd.f32 %v2117_v22, %v1384_v24 }
 0x6ea   : > { %v1390_v27 = vpack.c.bf16 %v1389_v26, %v1388_v25 }
 0x6ec   : > { %1934 = vmatmul.msk.bf16.vlgmr.msra.gmra.mxu1 %vm939_vm8, %v1390_v27 }
 0x769   : > { %v1439_v37 = vpop.f32.mrf.mxu1 }
 0x76a   : > { %v1440_v38 = vadd.f32 %v2118_v35, %v1439_v37 }
 0x76c   : > { %v1446_v39 = vmul.f32 0.044715, %v1440_v38  ;;  %v1444_v53 = vmul.f32 0.5, %v1440_v38 }
 0x76e   : > { %v1448_v40 = vmul.f32 %v1446_v39, %v1440_v38 }
 0x770   : > { %v1450_v41 = vmul.f32 %v1448_v40, %v1440_v38 }
 0x771   : > { %v1441_v42 = vpop.f32.mrf.mxu1 }
 0x772   : > { %v1452_v43 = vadd.f32 %v1450_v41, %v1440_v38  ;;  %v1442_v44 = vadd.f32 %v2118_v35, %v1441_v42 }
 0x774   : > { %v1447_v45 = vmul.f32 0.044715, %v1442_v44  ;;  %v1454_v46 = vmul.f32 0.7978846, %v1452_v43  ;;  %v1445_v54 = vmul.f32 0.5, %v1442_v44 }
 0x776   : > { %v1449_v47 = vmul.f32 %v1447_v45, %v1442_v44  ;;  %2144 = vtanh.f32 %v1454_v46 }
 0x778   : > { %v1451_v48 = vmul.f32 %v1449_v47, %v1442_v44 }
 0x77a   : > { %v1453_v49 = vadd.f32 %v1451_v48, %v1442_v44 }
 0x77c   : > { %v1455_v62 = vmul.f32 0.7978846, %v1453_v49  ;;  %v2145_v50 = vpop.eup %2144 }
 0x77d   : > { %v1458_v51 = vadd.f32 1.0, %v2145_v50 }
 0x77e   : > { %2146 = vtanh.f32 %v1455_v62 }
 0x77f   : > { %v1460_v56 = vmul.f32 %v1458_v51, %v1444_v53 }
 0x784   : > { %v2147_v52 = vpop.eup %2146 }
 0x785   : > { %v1459_v55 = vadd.f32 1.0, %v2147_v52 }
 0x787   : > { %v1461_v57 = vmul.f32 %v1459_v55, %v1445_v54 }
 0x789   : > { %v1462_v58 = vpack.c.bf16 %v1461_v57, %v1460_v56 }
 0x78b   : > { %1539 = vmatmul.bf16.vlgmr.msra.gmra.mxu3 %v1462_v58 }
 0x80e   : > { %v1540_v60 = vpop.f32.mrf.mxu3 }
 0x80f   : > { %v1541_v63 = vadd.f32 %v2119_v59, %v1540_v60 }
 0x811   : > { %v1545_v1 = vadd.f32 %v1541_v63, %v1388_v25 }
 0x813   : > { %v1549_v2 = vsel %vm939_vm8, %v1545_v1, 0.0 }
 0x814   : > { %1550 = vadd.xlane.f32.xlu1 %v1549_v2 }
 0x816   : > { %v1542_v3 = vpop.f32.mrf.mxu3 }
 0x817   : > { %v1543_v4 = vadd.f32 %v2119_v59, %v1542_v3 }
 0x819   : > { %v1546_v5 = vadd.f32 %v1543_v4, %v1389_v26 }
 0x81b   : > { %v1552_v6 = vsel %vm939_vm8, %v1546_v5, 0.0 }
 0x81c   : > { %1553 = vadd.xlane.f32.xlu0 %v1552_v6 }
 0x887   : > { %v1551_v7 = vpop.xlane.xlu1 %1550 }
 0x888   : > { %v1555_v0 = vmul.f32 %v1551_v7, %v2868_v61 }
 0x88a   : > { %v1557_v8 = vsub.f32 %v1545_v1, %v1555_v0 }
 0x88c   : > { %v1559_v9 = vmul.f32 %v1557_v8, %v1557_v8 }
 0x88e   : > { %v1561_v10 = vsel %vm939_vm8, %v1559_v9, 0.0 }
 0x88f   : > { %v1554_v11 = vpop.xlane.xlu0 %1553  ;;  %1562 = vadd.xlane.f32.xlu1 %v1561_v10 }
 0x890   : > { %v1556_v12 = vmul.f32 %v1554_v11, %v2868_v61 }
 0x892   : > { %v1558_v13 = vsub.f32 %v1546_v5, %v1556_v12 }
 0x894   : > { %v1560_v14 = vmul.f32 %v1558_v13, %v1558_v13 }
 0x896   : > { %v1564_v15 = vsel %vm939_vm8, %v1560_v14, 0.0 }
 0x897   : > { %1565 = vadd.xlane.f32.xlu0 %v1564_v15 }
 0x902   : > { %v1563_v17 = vpop.xlane.xlu1 %1562 }
 0x903   : > { %v1567_v16 = vmul.f32 %v1563_v17, %v2868_v61 }
 0x905   : > { %v1569_v19 = vadd.f32 1e-05, %v1567_v16 }
 0x907   : > { %2148 = vrsqrt.f32 %v1569_v19  ;;  %vm1577_vm5 = vweird.f32 %v1569_v19 }
 0x90a   : > { %v1566_v20 = vpop.xlane.xlu0 %1565 }
 0x90b   : > { %v1568_v21 = vmul.f32 %v1566_v20, %v2868_v61  ;;  %v2121_v61 = vld [vmem:[%s808_s13] ss:$0 sm:$0xff]  ;;  %s3009_s13 = sld [smem:[#allocation39_spill]] }
 0x90d   : > { %v2149_v22 = vpop.eup %2148  ;;  %v1570_v18 = vadd.f32 1e-05, %v1568_v21 }
 0x90e   : > { %v1572_v23 = vmul.f32 %v2149_v22, %v1569_v19  ;;  %vm1578_vm4 = vweird.f32 %v2149_v22 }
 0x90f   : > { %2150 = vrsqrt.f32 %v1570_v18  ;;  %vm1579_vm6 = vmor %vm1577_vm5, %vm1578_vm4  ;;  %vm1587_vm11 = vweird.f32 %v1570_v18 }
 0x910   : > { %v1573_v24 = vmul.f32 %v2149_v22, %v1572_v23 }
 0x911   : > { %s1614_s10 = sshll.u32 %s3009_s13, 4  ;;  %s1615_s10 = int_to_ptr.hbm [resolvable:$true] %s1614_s10 }
 0x912   : > { %v1574_v25 = vmul.f32 0.5, %v1573_v24 }
 0x914   : > { %v1575_v26 = vsub.f32 1.5, %v1574_v25 }
 0x915   : > { %v2151_v27 = vpop.eup %2150 }
 0x916   : > { %v1576_v28 = vmul.f32 %v2149_v22, %v1575_v26  ;;  %v1582_v29 = vmul.f32 %v2151_v27, %v1570_v18  ;;  %vm1588_vm7 = vweird.f32 %v2151_v27 }
 0x917   : > { %vm1589_vm12 = vmor %vm1587_vm11, %vm1588_vm7 }
 0x918   : > { %v1580_v31 = vsel %vm1579_vm6, %v2149_v22, %v1576_v28  ;;  %v1583_v32 = vmul.f32 %v2151_v27, %v1582_v29 }
 0x919   : > { %v1591_v33 = vmul.f32 %v1580_v31, %v1557_v8 }
 0x91a   : > { %v1584_v34 = vmul.f32 0.5, %v1583_v32 }
 0x91b   : > { %v1596_v35 = vmul.f32 %v2120_v30, %v1591_v33 }
 0x91c   : > { %v1585_v36 = vsub.f32 1.5, %v1584_v34 }
 0x91d   : > { %v1601_v37 = vadd.f32 %v2121_v61, %v1596_v35 }
 0x91e   : > { %v1586_v38 = vmul.f32 %v2151_v27, %v1585_v36 }
 0x91f   : > { %1603 = vst.msk [vmem:[#allocation2] sm:$0xff] %vm939_vm8, %v1601_v37 }
 0x920   : > { %v1590_v39 = vsel %vm1589_vm12, %v2151_v27, %v1586_v38  ;;  %1605 = vst.msk [vmem:[#allocation15] sm:$0xff] %vm939_vm8, %v1601_v37 }
 0x921   : > { %v1592_v40 = vmul.f32 %v1590_v39, %v1558_v13 }
 0x923   : > { %v1597_v41 = vmul.f32 %v2120_v30, %v1592_v40 }
 0x925   : > { %v1602_v42 = vadd.f32 %v2121_v61, %v1597_v41 }
 0x927   : > { %1604 = vst.msk [vmem:[#allocation2 + $0x8] sm:$0xff] %vm939_vm8, %v1602_v42 }
 0x928   : > { %1606 = vst.msk [vmem:[#allocation15 + $0x8] sm:$0xff] %vm939_vm8, %v1602_v42 }
 0x929   : > { %2020 = dma.vmem_to_hbm [thread:$0]  (%p2053_p4), %s1613_s28, 256, %s1615_s10, [#allocation5], %s2455_s2, %s2455_s2, %s2456_s6  }
 0x92a   : > { %2423 = dma.done.wait (%p2053_p4), [#allocation5], 256  }
 0x92b   : > { %2425 = vsyncadd (%p2053_p4), [#allocation5], 4294967040 }
 0x92c PF: > { %s3010_s24 = sld [smem:[#allocation22_spill]]  ;;  %s3013_s21 = smov %s2432_s22 }
 0x92d   : > { %s3011_s20 = sld [smem:[#allocation21_spill]] }
 0x92e   : > { %s3012_s23 = sld [smem:[#allocation23_spill]] }
 0x932   : > { %p32_p5 = scmp.ge.s32.totalorder %s3010_s24, 4  }
 0x933   : > { %s3014_s22 = smov %s3011_s20 }
 0x934   :  { %34 = sbr.rel (!%p32_p5) target bundleno = 25 (0x19), region = 197 }
 0x939   :  { %1631 = vsyncpa [#allocation4], 1 }
 0x93a   :  { %1633 = vsyncpa [#allocation4 + $0x1], 1 }
 0x93b   :  { %1634 = vsyncpa [#allocation7], 1 }
 0x93c   :  { %1635 = vsyncpa [#allocation10], 1 }
 0x93d   :  { %1637 = vsyncpa [#allocation10 + $0x1], 1 }
 0x93e   :  { %1638 = vsyncpa [#allocation13], 1 }
 0x93f   :  { %1640 = vsyncpa [#allocation13 + $0x1], 1 }
 0x940   :  { %1641 = vsyncpa [#allocation5], 1 }
 0x941   :  { %1643 = vsyncpa [#allocation5 + $0x1], 1 }

</bundles_post_ra>
